<compile_context>
chip_gen: v5e
topology: v5e:2x2
jax: 0.10.0
libtpu: 0.0.40
codegen_flags: <defaults>
</compile_context>

<pallas_src>
import jax
import jax.numpy as jnp
import numpy as np
from jax import lax
from jax.experimental import pallas as pl
from jax.experimental.pallas import tpu as pltpu


# Row offsets (all multiples of 8) of each packed tensor inside the single
# (1480, 128) f32 parameter buffer.
_W1E_OFF, _W1O_OFF = 0, 144          # conv1 Toeplitz weights, (140, 72) each
_W2E_OFF, _W2O_OFF = 288, 648        # conv2 Toeplitz weights, (360, 64) each
_WF1_OFF = 1008                      # (256, 120)
_WF2_OFF = 1264                      # (120, 84)
_WF3_OFF = 1384                      # (84, 10)
_B1_ROW, _B2_ROW = 1472, 1473        # biases, one row each
_BF1_ROW, _BF2_ROW, _BF3_ROW = 1474, 1475, 1476
_PROWS = 1480


# ----------------------------------------------------------------------------
# Fused LeNet kernel (one batch tile per grid step)
# ----------------------------------------------------------------------------
def _lenet_kernel(x_ref, p_ref, o_ref, p1_ref, p2_ref):
    f32 = jnp.float32
    n = x_ref.shape[0]                               # batch tile size (static)

    # ---------------- conv1 (+ fused bias/ReLU/2x2 max-pool) -----------------
    # Even/odd output rows  <- stride-2 sublane reads of the input.
    # Even/odd output cols  <- the two Toeplitz weight matrices W1E / W1O.
    lhs_e = jnp.concatenate(
        [x_ref[:, pl.ds(kh, 12, stride=2), :].reshape(n * 12, 28)
         for kh in range(5)], axis=1)                # (n*12, 140)
    lhs_o = jnp.concatenate(
        [x_ref[:, pl.ds(kh + 1, 12, stride=2), :].reshape(n * 12, 28)
         for kh in range(5)], axis=1)                # (n*12, 140)
    w1e = p_ref[_W1E_OFF:_W1E_OFF + 140, 0:72]
    w1o = p_ref[_W1O_OFF:_W1O_OFF + 140, 0:72]
    y1 = jnp.maximum(
        jnp.maximum(jnp.dot(lhs_e, w1e, preferred_element_type=f32),
                    jnp.dot(lhs_e, w1o, preferred_element_type=f32)),
        jnp.maximum(jnp.dot(lhs_o, w1e, preferred_element_type=f32),
                    jnp.dot(lhs_o, w1o, preferred_element_type=f32)))
    # bias + ReLU commute with the max-pool; lanes are (w, c) = w*6 + c.
    p1 = jnp.maximum(y1 + p_ref[_B1_ROW:_B1_ROW + 1, 0:72], 0.0)   # (n*12, 72)
    p1_ref[...] = p1.reshape(n, 12, 72)

    # ---------------- conv2 (+ fused bias/ReLU/2x2 max-pool) -----------------
    lhs2_e = jnp.concatenate(
        [p1_ref[:, pl.ds(kh, 4, stride=2), :].reshape(n * 4, 72)
         for kh in range(5)], axis=1)                # (n*4, 360)
    lhs2_o = jnp.concatenate(
        [p1_ref[:, pl.ds(kh + 1, 4, stride=2), :].reshape(n * 4, 72)
         for kh in range(5)], axis=1)                # (n*4, 360)
    w2e = p_ref[_W2E_OFF:_W2E_OFF + 360, 0:64]
    w2o = p_ref[_W2O_OFF:_W2O_OFF + 360, 0:64]
    y2 = jnp.maximum(
        jnp.maximum(jnp.dot(lhs2_e, w2e, preferred_element_type=f32),
                    jnp.dot(lhs2_e, w2o, preferred_element_type=f32)),
        jnp.maximum(jnp.dot(lhs2_o, w2e, preferred_element_type=f32),
                    jnp.dot(lhs2_o, w2o, preferred_element_type=f32)))
    # lanes are (jq, cout) = jq*16 + cout
    p2 = jnp.maximum(y2 + p_ref[_B2_ROW:_B2_ROW + 1, 0:64], 0.0)   # (n*4, 64)
    p2_ref[...] = p2.reshape(n, 4, 64)

    # ---------------- flatten + fc1 + fc2 + fc3 ------------------------------
    # flat feature order is (q, jq, cout); PyTorch's NCHW .view(-1, 256)
    # order is baked into the packed fc1 weight instead.
    flat = jnp.concatenate([p2_ref[:, q, :] for q in range(4)], axis=1)  # (n,256)
    h = jnp.maximum(
        jnp.dot(flat, p_ref[_WF1_OFF:_WF1_OFF + 256, 0:120],
                preferred_element_type=f32)
        + p_ref[_BF1_ROW:_BF1_ROW + 1, 0:120], 0.0)                      # (n,120)
    h = jnp.maximum(
        jnp.dot(h, p_ref[_WF2_OFF:_WF2_OFF + 120, 0:84],
                preferred_element_type=f32)
        + p_ref[_BF2_ROW:_BF2_ROW + 1, 0:84], 0.0)                       # (n,84)
    out = (jnp.dot(h, p_ref[_WF3_OFF:_WF3_OFF + 84, 0:10],
                   preferred_element_type=f32)
           + p_ref[_BF3_ROW:_BF3_ROW + 1, 0:10])                         # (n,10)
    o_ref[...] = out.astype(o_ref.dtype)


# ----------------------------------------------------------------------------
# Forward wrapper: one pallas_call, batch tiled over a "parallel" grid axis.
# ----------------------------------------------------------------------------
@jax.jit
def lenet_forward(packed, x):
    """x: (N, 1, 28, 28) float32 NCHW -> logits (N, 10)."""
    n = x.shape[0]
    x3 = x.reshape(n, 28, 28)                   # Cin == 1: pure relabel
    tb = n if n <= 8 else 8                     # batch tile per grid step
    assert n % tb == 0, "batch must be a multiple of the batch tile"
    return pl.pallas_call(
        _lenet_kernel,
        out_shape=jax.ShapeDtypeStruct((n, 10), jnp.float32),
        grid=(n // tb,),
        in_specs=[
            pl.BlockSpec((tb, 28, 28), lambda i: (i, 0, 0)),
            pl.BlockSpec((_PROWS, 128), lambda i: (0, 0)),
        ],
        out_specs=pl.BlockSpec((tb, 10), lambda i: (i, 0)),
        scratch_shapes=[pltpu.VMEM((tb, 12, 72), jnp.float32),   # pool1
                        pltpu.VMEM((tb, 4, 64), jnp.float32)],   # pool2
        compiler_params=pltpu.CompilerParams(
            dimension_semantics=("parallel",)),
    )(x3, packed)


# ----------------------------------------------------------------------------
# Parameters: PyTorch-style init + one-time packing (hoisted out of forward).
# ----------------------------------------------------------------------------
def _uniform(key, shape, bound):
    return jax.random.uniform(key, shape, jnp.float32, -bound, bound)


def init_lenet_params(key):
    ks = jax.random.split(key, 10)
    p = {}
    b = 1.0 / (1 * 5 * 5) ** 0.5
    p["conv1_w"] = _uniform(ks[0], (6, 1, 5, 5), b)
    p["conv1_b"] = _uniform(ks[1], (6,), b)
    b = 1.0 / (6 * 5 * 5) ** 0.5
    p["conv2_w"] = _uniform(ks[2], (16, 6, 5, 5), b)
    p["conv2_b"] = _uniform(ks[3], (16,), b)
    b = 1.0 / 256 ** 0.5
    p["fc1_w"] = _uniform(ks[4], (120, 256), b)
    p["fc1_b"] = _uniform(ks[5], (120,), b)
    b = 1.0 / 120 ** 0.5
    p["fc2_w"] = _uniform(ks[6], (84, 120), b)
    p["fc2_b"] = _uniform(ks[7], (84,), b)
    b = 1.0 / 84 ** 0.5
    p["fc3_w"] = _uniform(ks[8], (10, 84), b)
    p["fc3_b"] = _uniform(ks[9], (10,), b)
    return p


def pack_params(p):
    """Pack all PyTorch-layout params into ONE lane-dense (1480,128) buffer."""
    w1 = np.asarray(p["conv1_w"], np.float32)   # (6, 1, 5, 5)
    w2 = np.asarray(p["conv2_w"], np.float32)   # (16, 6, 5, 5)
    buf = np.zeros((_PROWS, 128), np.float32)

    # conv1 Toeplitz weights; W-pool (even / odd output column) folded in.
    # LHS lane = kh*28 + win ; output lane = w*6 + c (w = pooled W index).
    w1e = np.zeros((140, 72), np.float32)
    w1o = np.zeros((140, 72), np.float32)
    for c in range(6):
        for kh in range(5):
            for kw in range(5):
                for w in range(12):
                    w1e[kh * 28 + 2 * w + kw, w * 6 + c] = w1[c, 0, kh, kw]
                    w1o[kh * 28 + 2 * w + 1 + kw, w * 6 + c] = w1[c, 0, kh, kw]
    buf[_W1E_OFF:_W1E_OFF + 140, 0:72] = w1e
    buf[_W1O_OFF:_W1O_OFF + 140, 0:72] = w1o

    # conv2 Toeplitz weights; LHS lane = kh*72 + w1*6 + cin,
    # output lane = jq*16 + cout (jq = pooled W index).
    w2e = np.zeros((360, 64), np.float32)
    w2o = np.zeros((360, 64), np.float32)
    for co in range(16):
        for ci in range(6):
            for kh in range(5):
                for kw in range(5):
                    for jq in range(4):
                        w2e[kh * 72 + (2 * jq + kw) * 6 + ci,
                            jq * 16 + co] = w2[co, ci, kh, kw]
                        w2o[kh * 72 + (2 * jq + 1 + kw) * 6 + ci,
                            jq * 16 + co] = w2[co, ci, kh, kw]
    buf[_W2E_OFF:_W2E_OFF + 360, 0:64] = w2e
    buf[_W2O_OFF:_W2O_OFF + 360, 0:64] = w2o

    # fc1: kernel feature order (q, jq, c)  <->  torch order (c, q, jq).
    wf1 = np.asarray(p["fc1_w"], np.float32).reshape(120, 16, 4, 4)
    wf1 = wf1.transpose(2, 3, 1, 0).reshape(256, 120)
    buf[_WF1_OFF:_WF1_OFF + 256, 0:120] = wf1
    buf[_WF2_OFF:_WF2_OFF + 120, 0:84] = np.asarray(p["fc2_w"], np.float32).T
    buf[_WF3_OFF:_WF3_OFF + 84, 0:10] = np.asarray(p["fc3_w"], np.float32).T

    # Biases (conv biases tiled over the lane-folded spatial dim).
    buf[_B1_ROW, 0:72] = np.tile(np.asarray(p["conv1_b"], np.float32), 12)
    buf[_B2_ROW, 0:64] = np.tile(np.asarray(p["conv2_b"], np.float32), 4)
    buf[_BF1_ROW, 0:120] = np.asarray(p["fc1_b"], np.float32)
    buf[_BF2_ROW, 0:84] = np.asarray(p["fc2_b"], np.float32)
    buf[_BF3_ROW, 0:10] = np.asarray(p["fc3_b"], np.float32)
    return jnp.asarray(buf)


# ----------------------------------------------------------------------------
# Pure-JAX reference (mirrors the PyTorch module) for correctness checking.
# ----------------------------------------------------------------------------
def _pool2x2_ref(y):
    n, c, h, w = y.shape
    return y.reshape(n, c, h // 2, 2, w // 2, 2).max(axis=(3, 5))


def lenet_reference(params, x):
    hp = lax.Precision.HIGHEST
    y = lax.conv_general_dilated(
        x, params["conv1_w"], window_strides=(1, 1), padding="VALID",
        dimension_numbers=("NCHW", "OIHW", "NCHW"), precision=hp)
    y = _pool2x2_ref(jax.nn.relu(y + params["conv1_b"].reshape(1, -1, 1, 1)))
    y = lax.conv_general_dilated(
        y, params["conv2_w"], window_strides=(1, 1), padding="VALID",
        dimension_numbers=("NCHW", "OIHW", "NCHW"), precision=hp)
    y = _pool2x2_ref(jax.nn.relu(y + params["conv2_b"].reshape(1, -1, 1, 1)))
    y = y.reshape(y.shape[0], -1)
    y = jax.nn.relu(jnp.dot(y, params["fc1_w"].T, precision=hp) + params["fc1_b"])
    y = jax.nn.relu(jnp.dot(y, params["fc2_w"].T, precision=hp) + params["fc2_b"])
    return jnp.dot(y, params["fc3_w"].T, precision=hp) + params["fc3_b"]


if __name__ == "__main__":
    key = jax.random.PRNGKey(0)
    pkey, xkey = jax.random.split(key)
    params = init_lenet_params(pkey)
    packed = pack_params(params)          # packing done once, outside forward

    # MNIST-shaped input (28x28 is required by fc1's 16*4*4 flatten), batch=2.
    x = jax.random.normal(xkey, (2, 1, 28, 28), dtype=jnp.float32)

    out = jax.block_until_ready(lenet_forward(packed, x))
    assert out.shape == (2, 10), out.shape
    assert out.dtype == jnp.float32, out.dtype

    ref = jax.block_until_ready(lenet_reference(params, x))
    np.testing.assert_allclose(np.asarray(out), np.asarray(ref),
                               rtol=2e-3, atol=2e-3)
    print("KERNEL_OK")
</pallas_src>

<mosaic_0001>
module attributes {stable_mosaic.version = 11 : i64} {
  func.func @_lenet_kernel(%arg0: i32, %arg1: memref<2x28x28xf32, #tpu.memory_space<vmem>>, %arg2: memref<1480x128xf32, #tpu.memory_space<vmem>>, %arg3: memref<2x10xf32, #tpu.memory_space<vmem>>, %arg4: memref<2x12x72xf32, #tpu.memory_space<vmem>>, %arg5: memref<2x4x64xf32, #tpu.memory_space<vmem>>) attributes {dimension_semantics = [#tpu.dimension_semantics<parallel>], iteration_bounds = array<i64: 1>, scalar_prefetch = 0 : i64, scratch_operands = 2 : i64, tpu.core_type = #tpu.core_type<tc>, window_params = [{transform_indices = @transform_0, window_bounds = array<i64: 2, 28, 28>}, {pipeline_mode = #tpu.pipeline_mode<synchronous>, transform_indices = @transform_1, window_bounds = array<i64: 1480, 128>}, {transform_indices = @transform_2, window_bounds = array<i64: 2, 10>}]} {
    %c0 = arith.constant 0 : index
    %c0_0 = arith.constant 0 : index
    %c0_1 = arith.constant 0 : index
    %0 = tpu.strided_load %arg1[%c0, %c0_0, %c0_1] {strides = array<i32: 1, 2, 1>} : memref<2x28x28xf32, #tpu.memory_space<vmem>>, vector<2x12x28xf32>
    %1 = vector.shape_cast %0 : vector<2x12x28xf32> to vector<24x28xf32>
    %c0_2 = arith.constant 0 : index
    %c1 = arith.constant 1 : index
    %c0_3 = arith.constant 0 : index
    %2 = tpu.strided_load %arg1[%c0_2, %c1, %c0_3] {strides = array<i32: 1, 2, 1>} : memref<2x28x28xf32, #tpu.memory_space<vmem>>, vector<2x12x28xf32>
    %3 = vector.shape_cast %2 : vector<2x12x28xf32> to vector<24x28xf32>
    %c0_4 = arith.constant 0 : index
    %c2 = arith.constant 2 : index
    %c0_5 = arith.constant 0 : index
    %4 = tpu.strided_load %arg1[%c0_4, %c2, %c0_5] {strides = array<i32: 1, 2, 1>} : memref<2x28x28xf32, #tpu.memory_space<vmem>>, vector<2x12x28xf32>
    %5 = vector.shape_cast %4 : vector<2x12x28xf32> to vector<24x28xf32>
    %c0_6 = arith.constant 0 : index
    %c3 = arith.constant 3 : index
    %c0_7 = arith.constant 0 : index
    %6 = tpu.strided_load %arg1[%c0_6, %c3, %c0_7] {strides = array<i32: 1, 2, 1>} : memref<2x28x28xf32, #tpu.memory_space<vmem>>, vector<2x12x28xf32>
    %7 = vector.shape_cast %6 : vector<2x12x28xf32> to vector<24x28xf32>
    %c0_8 = arith.constant 0 : index
    %c4 = arith.constant 4 : index
    %c0_9 = arith.constant 0 : index
    %8 = tpu.strided_load %arg1[%c0_8, %c4, %c0_9] {strides = array<i32: 1, 2, 1>} : memref<2x28x28xf32, #tpu.memory_space<vmem>>, vector<2x12x28xf32>
    %9 = vector.shape_cast %8 : vector<2x12x28xf32> to vector<24x28xf32>
    %10 = tpu.concatenate %1, %3, %5, %7, %9 in 1 : vector<24x28xf32>, vector<24x28xf32>, vector<24x28xf32>, vector<24x28xf32>, vector<24x28xf32> -> vector<24x140xf32>
    %c0_10 = arith.constant 0 : index
    %c1_11 = arith.constant 1 : index
    %c0_12 = arith.constant 0 : index
    %11 = tpu.strided_load %arg1[%c0_10, %c1_11, %c0_12] {strides = array<i32: 1, 2, 1>} : memref<2x28x28xf32, #tpu.memory_space<vmem>>, vector<2x12x28xf32>
    %12 = vector.shape_cast %11 : vector<2x12x28xf32> to vector<24x28xf32>
    %c0_13 = arith.constant 0 : index
    %c2_14 = arith.constant 2 : index
    %c0_15 = arith.constant 0 : index
    %13 = tpu.strided_load %arg1[%c0_13, %c2_14, %c0_15] {strides = array<i32: 1, 2, 1>} : memref<2x28x28xf32, #tpu.memory_space<vmem>>, vector<2x12x28xf32>
    %14 = vector.shape_cast %13 : vector<2x12x28xf32> to vector<24x28xf32>
    %c0_16 = arith.constant 0 : index
    %c3_17 = arith.constant 3 : index
    %c0_18 = arith.constant 0 : index
    %15 = tpu.strided_load %arg1[%c0_16, %c3_17, %c0_18] {strides = array<i32: 1, 2, 1>} : memref<2x28x28xf32, #tpu.memory_space<vmem>>, vector<2x12x28xf32>
    %16 = vector.shape_cast %15 : vector<2x12x28xf32> to vector<24x28xf32>
    %c0_19 = arith.constant 0 : index
    %c4_20 = arith.constant 4 : index
    %c0_21 = arith.constant 0 : index
    %17 = tpu.strided_load %arg1[%c0_19, %c4_20, %c0_21] {strides = array<i32: 1, 2, 1>} : memref<2x28x28xf32, #tpu.memory_space<vmem>>, vector<2x12x28xf32>
    %18 = vector.shape_cast %17 : vector<2x12x28xf32> to vector<24x28xf32>
    %c0_22 = arith.constant 0 : index
    %c5 = arith.constant 5 : index
    %c0_23 = arith.constant 0 : index
    %19 = tpu.strided_load %arg1[%c0_22, %c5, %c0_23] {strides = array<i32: 1, 2, 1>} : memref<2x28x28xf32, #tpu.memory_space<vmem>>, vector<2x12x28xf32>
    %20 = vector.shape_cast %19 : vector<2x12x28xf32> to vector<24x28xf32>
    %21 = tpu.concatenate %12, %14, %16, %18, %20 in 1 : vector<24x28xf32>, vector<24x28xf32>, vector<24x28xf32>, vector<24x28xf32>, vector<24x28xf32> -> vector<24x140xf32>
    %c0_24 = arith.constant 0 : index
    %c0_25 = arith.constant 0 : index
    %22 = vector.load %arg2[%c0_24, %c0_25] : memref<1480x128xf32, #tpu.memory_space<vmem>>, vector<140x72xf32>
    %c144 = arith.constant 144 : index
    %c0_26 = arith.constant 0 : index
    %23 = vector.load %arg2[%c144, %c0_26] : memref<1480x128xf32, #tpu.memory_space<vmem>>, vector<140x72xf32>
    %cst = arith.constant dense<0.000000e+00> : vector<24x72xf32>
    %24 = tpu.matmul %10, %22, %cst {dimension_numbers = #tpu.dot_dimension_numbers<[1], [0], [0], [1], [0, 0, 1, 1], [], []>} : vector<24x140xf32>, vector<140x72xf32>, vector<24x72xf32> -> vector<24x72xf32>
    %cst_27 = arith.constant dense<0.000000e+00> : vector<24x72xf32>
    %25 = tpu.matmul %10, %23, %cst_27 {dimension_numbers = #tpu.dot_dimension_numbers<[1], [0], [0], [1], [0, 0, 1, 1], [], []>} : vector<24x140xf32>, vector<140x72xf32>, vector<24x72xf32> -> vector<24x72xf32>
    %26 = arith.maximumf %24, %25 : vector<24x72xf32>
    %cst_28 = arith.constant dense<0.000000e+00> : vector<24x72xf32>
    %27 = tpu.matmul %21, %22, %cst_28 {dimension_numbers = #tpu.dot_dimension_numbers<[1], [0], [0], [1], [0, 0, 1, 1], [], []>} : vector<24x140xf32>, vector<140x72xf32>, vector<24x72xf32> -> vector<24x72xf32>
    %cst_29 = arith.constant dense<0.000000e+00> : vector<24x72xf32>
    %28 = tpu.matmul %21, %23, %cst_29 {dimension_numbers = #tpu.dot_dimension_numbers<[1], [0], [0], [1], [0, 0, 1, 1], [], []>} : vector<24x140xf32>, vector<140x72xf32>, vector<24x72xf32> -> vector<24x72xf32>
    %29 = arith.maximumf %27, %28 : vector<24x72xf32>
    %30 = arith.maximumf %26, %29 : vector<24x72xf32>
    %c1472 = arith.constant 1472 : index
    %c0_30 = arith.constant 0 : index
    %31 = vector.load %arg2[%c1472, %c0_30] : memref<1480x128xf32, #tpu.memory_space<vmem>>, vector<1x72xf32>
    %32 = vector.broadcast %31 : vector<1x72xf32> to vector<24x72xf32>
    %33 = arith.addf %30, %32 : vector<24x72xf32>
    %cst_31 = arith.constant 0.000000e+00 : f32
    %34 = vector.broadcast %cst_31 : f32 to vector<24x72xf32>
    %35 = arith.maximumf %33, %34 : vector<24x72xf32>
    %36 = vector.shape_cast %35 : vector<24x72xf32> to vector<2x12x72xf32>
    %c0_32 = arith.constant 0 : index
    %c0_33 = arith.constant 0 : index
    %c0_34 = arith.constant 0 : index
    %37 = vector.load %arg4[%c0_32, %c0_33, %c0_34] : memref<2x12x72xf32, #tpu.memory_space<vmem>>, vector<2x12x72xf32>
    tpu.vector_store %arg4[%c0_32, %c0_33, %c0_34], %36 {strides = array<i32>} : memref<2x12x72xf32, #tpu.memory_space<vmem>>, vector<2x12x72xf32>,
    %c0_35 = arith.constant 0 : index
    %c0_36 = arith.constant 0 : index
    %c0_37 = arith.constant 0 : index
    %38 = tpu.strided_load %arg4[%c0_35, %c0_36, %c0_37] {strides = array<i32: 1, 2, 1>} : memref<2x12x72xf32, #tpu.memory_space<vmem>>, vector<2x4x72xf32>
    %39 = vector.shape_cast %38 : vector<2x4x72xf32> to vector<8x72xf32>
    %c0_38 = arith.constant 0 : index
    %c1_39 = arith.constant 1 : index
    %c0_40 = arith.constant 0 : index
    %40 = tpu.strided_load %arg4[%c0_38, %c1_39, %c0_40] {strides = array<i32: 1, 2, 1>} : memref<2x12x72xf32, #tpu.memory_space<vmem>>, vector<2x4x72xf32>
    %41 = vector.shape_cast %40 : vector<2x4x72xf32> to vector<8x72xf32>
    %c0_41 = arith.constant 0 : index
    %c2_42 = arith.constant 2 : index
    %c0_43 = arith.constant 0 : index
    %42 = tpu.strided_load %arg4[%c0_41, %c2_42, %c0_43] {strides = array<i32: 1, 2, 1>} : memref<2x12x72xf32, #tpu.memory_space<vmem>>, vector<2x4x72xf32>
    %43 = vector.shape_cast %42 : vector<2x4x72xf32> to vector<8x72xf32>
    %c0_44 = arith.constant 0 : index
    %c3_45 = arith.constant 3 : index
    %c0_46 = arith.constant 0 : index
    %44 = tpu.strided_load %arg4[%c0_44, %c3_45, %c0_46] {strides = array<i32: 1, 2, 1>} : memref<2x12x72xf32, #tpu.memory_space<vmem>>, vector<2x4x72xf32>
    %45 = vector.shape_cast %44 : vector<2x4x72xf32> to vector<8x72xf32>
    %c0_47 = arith.constant 0 : index
    %c4_48 = arith.constant 4 : index
    %c0_49 = arith.constant 0 : index
    %46 = tpu.strided_load %arg4[%c0_47, %c4_48, %c0_49] {strides = array<i32: 1, 2, 1>} : memref<2x12x72xf32, #tpu.memory_space<vmem>>, vector<2x4x72xf32>
    %47 = vector.shape_cast %46 : vector<2x4x72xf32> to vector<8x72xf32>
    %48 = tpu.concatenate %39, %41, %43, %45, %47 in 1 : vector<8x72xf32>, vector<8x72xf32>, vector<8x72xf32>, vector<8x72xf32>, vector<8x72xf32> -> vector<8x360xf32>
    %c0_50 = arith.constant 0 : index
    %c1_51 = arith.constant 1 : index
    %c0_52 = arith.constant 0 : index
    %49 = tpu.strided_load %arg4[%c0_50, %c1_51, %c0_52] {strides = array<i32: 1, 2, 1>} : memref<2x12x72xf32, #tpu.memory_space<vmem>>, vector<2x4x72xf32>
    %50 = vector.shape_cast %49 : vector<2x4x72xf32> to vector<8x72xf32>
    %c0_53 = arith.constant 0 : index
    %c2_54 = arith.constant 2 : index
    %c0_55 = arith.constant 0 : index
    %51 = tpu.strided_load %arg4[%c0_53, %c2_54, %c0_55] {strides = array<i32: 1, 2, 1>} : memref<2x12x72xf32, #tpu.memory_space<vmem>>, vector<2x4x72xf32>
    %52 = vector.shape_cast %51 : vector<2x4x72xf32> to vector<8x72xf32>
    %c0_56 = arith.constant 0 : index
    %c3_57 = arith.constant 3 : index
    %c0_58 = arith.constant 0 : index
    %53 = tpu.strided_load %arg4[%c0_56, %c3_57, %c0_58] {strides = array<i32: 1, 2, 1>} : memref<2x12x72xf32, #tpu.memory_space<vmem>>, vector<2x4x72xf32>
    %54 = vector.shape_cast %53 : vector<2x4x72xf32> to vector<8x72xf32>
    %c0_59 = arith.constant 0 : index
    %c4_60 = arith.constant 4 : index
    %c0_61 = arith.constant 0 : index
    %55 = tpu.strided_load %arg4[%c0_59, %c4_60, %c0_61] {strides = array<i32: 1, 2, 1>} : memref<2x12x72xf32, #tpu.memory_space<vmem>>, vector<2x4x72xf32>
    %56 = vector.shape_cast %55 : vector<2x4x72xf32> to vector<8x72xf32>
    %c0_62 = arith.constant 0 : index
    %c5_63 = arith.constant 5 : index
    %c0_64 = arith.constant 0 : index
    %57 = tpu.strided_load %arg4[%c0_62, %c5_63, %c0_64] {strides = array<i32: 1, 2, 1>} : memref<2x12x72xf32, #tpu.memory_space<vmem>>, vector<2x4x72xf32>
    %58 = vector.shape_cast %57 : vector<2x4x72xf32> to vector<8x72xf32>
    %59 = tpu.concatenate %50, %52, %54, %56, %58 in 1 : vector<8x72xf32>, vector<8x72xf32>, vector<8x72xf32>, vector<8x72xf32>, vector<8x72xf32> -> vector<8x360xf32>
    %c288 = arith.constant 288 : index
    %c0_65 = arith.constant 0 : index
    %60 = vector.load %arg2[%c288, %c0_65] : memref<1480x128xf32, #tpu.memory_space<vmem>>, vector<360x64xf32>
    %c648 = arith.constant 648 : index
    %c0_66 = arith.constant 0 : index
    %61 = vector.load %arg2[%c648, %c0_66] : memref<1480x128xf32, #tpu.memory_space<vmem>>, vector<360x64xf32>
    %cst_67 = arith.constant dense<0.000000e+00> : vector<8x64xf32>
    %62 = tpu.matmul %48, %60, %cst_67 {dimension_numbers = #tpu.dot_dimension_numbers<[1], [0], [0], [1], [0, 0, 1, 1], [], []>} : vector<8x360xf32>, vector<360x64xf32>, vector<8x64xf32> -> vector<8x64xf32>
    %cst_68 = arith.constant dense<0.000000e+00> : vector<8x64xf32>
    %63 = tpu.matmul %48, %61, %cst_68 {dimension_numbers = #tpu.dot_dimension_numbers<[1], [0], [0], [1], [0, 0, 1, 1], [], []>} : vector<8x360xf32>, vector<360x64xf32>, vector<8x64xf32> -> vector<8x64xf32>
    %64 = arith.maximumf %62, %63 : vector<8x64xf32>
    %cst_69 = arith.constant dense<0.000000e+00> : vector<8x64xf32>
    %65 = tpu.matmul %59, %60, %cst_69 {dimension_numbers = #tpu.dot_dimension_numbers<[1], [0], [0], [1], [0, 0, 1, 1], [], []>} : vector<8x360xf32>, vector<360x64xf32>, vector<8x64xf32> -> vector<8x64xf32>
    %cst_70 = arith.constant dense<0.000000e+00> : vector<8x64xf32>
    %66 = tpu.matmul %59, %61, %cst_70 {dimension_numbers = #tpu.dot_dimension_numbers<[1], [0], [0], [1], [0, 0, 1, 1], [], []>} : vector<8x360xf32>, vector<360x64xf32>, vector<8x64xf32> -> vector<8x64xf32>
    %67 = arith.maximumf %65, %66 : vector<8x64xf32>
    %68 = arith.maximumf %64, %67 : vector<8x64xf32>
    %c1473 = arith.constant 1473 : index
    %c0_71 = arith.constant 0 : index
    %69 = vector.load %arg2[%c1473, %c0_71] : memref<1480x128xf32, #tpu.memory_space<vmem>>, vector<1x64xf32>
    %70 = vector.broadcast %69 : vector<1x64xf32> to vector<8x64xf32>
    %71 = arith.addf %68, %70 : vector<8x64xf32>
    %cst_72 = arith.constant 0.000000e+00 : f32
    %72 = vector.broadcast %cst_72 : f32 to vector<8x64xf32>
    %73 = arith.maximumf %71, %72 : vector<8x64xf32>
    %74 = vector.shape_cast %73 : vector<8x64xf32> to vector<2x4x64xf32>
    %c0_73 = arith.constant 0 : index
    %c0_74 = arith.constant 0 : index
    %c0_75 = arith.constant 0 : index
    %75 = vector.load %arg5[%c0_73, %c0_74, %c0_75] : memref<2x4x64xf32, #tpu.memory_space<vmem>>, vector<2x4x64xf32>
    tpu.vector_store %arg5[%c0_73, %c0_74, %c0_75], %74 {strides = array<i32>} : memref<2x4x64xf32, #tpu.memory_space<vmem>>, vector<2x4x64xf32>,
    %c0_76 = arith.constant 0 : index
    %c0_77 = arith.constant 0 : index
    %c0_78 = arith.constant 0 : index
    %76 = vector.load %arg5[%c0_76, %c0_77, %c0_78] : memref<2x4x64xf32, #tpu.memory_space<vmem>>, vector<2x1x64xf32>
    %77 = vector.shape_cast %76 : vector<2x1x64xf32> to vector<2x64xf32>
    %c0_79 = arith.constant 0 : index
    %c1_80 = arith.constant 1 : index
    %c0_81 = arith.constant 0 : index
    %78 = vector.load %arg5[%c0_79, %c1_80, %c0_81] : memref<2x4x64xf32, #tpu.memory_space<vmem>>, vector<2x1x64xf32>
    %79 = vector.shape_cast %78 : vector<2x1x64xf32> to vector<2x64xf32>
    %c0_82 = arith.constant 0 : index
    %c2_83 = arith.constant 2 : index
    %c0_84 = arith.constant 0 : index
    %80 = vector.load %arg5[%c0_82, %c2_83, %c0_84] : memref<2x4x64xf32, #tpu.memory_space<vmem>>, vector<2x1x64xf32>
    %81 = vector.shape_cast %80 : vector<2x1x64xf32> to vector<2x64xf32>
    %c0_85 = arith.constant 0 : index
    %c3_86 = arith.constant 3 : index
    %c0_87 = arith.constant 0 : index
    %82 = vector.load %arg5[%c0_85, %c3_86, %c0_87] : memref<2x4x64xf32, #tpu.memory_space<vmem>>, vector<2x1x64xf32>
    %83 = vector.shape_cast %82 : vector<2x1x64xf32> to vector<2x64xf32>
    %84 = tpu.concatenate %77, %79, %81, %83 in 1 : vector<2x64xf32>, vector<2x64xf32>, vector<2x64xf32>, vector<2x64xf32> -> vector<2x256xf32>
    %c1008 = arith.constant 1008 : index
    %c0_88 = arith.constant 0 : index
    %85 = vector.load %arg2[%c1008, %c0_88] : memref<1480x128xf32, #tpu.memory_space<vmem>>, vector<256x120xf32>
    %cst_89 = arith.constant dense<0.000000e+00> : vector<2x120xf32>
    %86 = tpu.matmul %84, %85, %cst_89 {dimension_numbers = #tpu.dot_dimension_numbers<[1], [0], [0], [1], [0, 0, 1, 1], [], []>} : vector<2x256xf32>, vector<256x120xf32>, vector<2x120xf32> -> vector<2x120xf32>
    %c1474 = arith.constant 1474 : index
    %c0_90 = arith.constant 0 : index
    %87 = vector.load %arg2[%c1474, %c0_90] : memref<1480x128xf32, #tpu.memory_space<vmem>>, vector<1x120xf32>
    %88 = vector.broadcast %87 : vector<1x120xf32> to vector<2x120xf32>
    %89 = arith.addf %86, %88 : vector<2x120xf32>
    %cst_91 = arith.constant 0.000000e+00 : f32
    %90 = vector.broadcast %cst_91 : f32 to vector<2x120xf32>
    %91 = arith.maximumf %89, %90 : vector<2x120xf32>
    %c1264 = arith.constant 1264 : index
    %c0_92 = arith.constant 0 : index
    %92 = vector.load %arg2[%c1264, %c0_92] : memref<1480x128xf32, #tpu.memory_space<vmem>>, vector<120x84xf32>
    %cst_93 = arith.constant dense<0.000000e+00> : vector<2x84xf32>
    %93 = tpu.matmul %91, %92, %cst_93 {dimension_numbers = #tpu.dot_dimension_numbers<[1], [0], [0], [1], [0, 0, 1, 1], [], []>} : vector<2x120xf32>, vector<120x84xf32>, vector<2x84xf32> -> vector<2x84xf32>
    %c1475 = arith.constant 1475 : index
    %c0_94 = arith.constant 0 : index
    %94 = vector.load %arg2[%c1475, %c0_94] : memref<1480x128xf32, #tpu.memory_space<vmem>>, vector<1x84xf32>
    %95 = vector.broadcast %94 : vector<1x84xf32> to vector<2x84xf32>
    %96 = arith.addf %93, %95 : vector<2x84xf32>
    %cst_95 = arith.constant 0.000000e+00 : f32
    %97 = vector.broadcast %cst_95 : f32 to vector<2x84xf32>
    %98 = arith.maximumf %96, %97 : vector<2x84xf32>
    %c1384 = arith.constant 1384 : index
    %c0_96 = arith.constant 0 : index
    %99 = vector.load %arg2[%c1384, %c0_96] : memref<1480x128xf32, #tpu.memory_space<vmem>>, vector<84x10xf32>
    %cst_97 = arith.constant dense<0.000000e+00> : vector<2x10xf32>
    %100 = tpu.matmul %98, %99, %cst_97 {dimension_numbers = #tpu.dot_dimension_numbers<[1], [0], [0], [1], [0, 0, 1, 1], [], []>} : vector<2x84xf32>, vector<84x10xf32>, vector<2x10xf32> -> vector<2x10xf32>
    %c1476 = arith.constant 1476 : index
    %c0_98 = arith.constant 0 : index
    %101 = vector.load %arg2[%c1476, %c0_98] : memref<1480x128xf32, #tpu.memory_space<vmem>>, vector<1x10xf32>
    %102 = vector.broadcast %101 : vector<1x10xf32> to vector<2x10xf32>
    %103 = arith.addf %100, %102 : vector<2x10xf32>
    %c0_99 = arith.constant 0 : index
    %c0_100 = arith.constant 0 : index
    %104 = vector.load %arg3[%c0_99, %c0_100] : memref<2x10xf32, #tpu.memory_space<vmem>>, vector<2x10xf32>
    tpu.vector_store %arg3[%c0_99, %c0_100], %103 {strides = array<i32>} : memref<2x10xf32, #tpu.memory_space<vmem>>, vector<2x10xf32>,
    return
  }
  func.func @transform_0(%arg0: i32) -> (i32, i32, i32) {
    %c0_i32 = arith.constant 0 : i32
    %c0_i32_0 = arith.constant 0 : i32
    %c0_i32_1 = arith.constant 0 : i32
    return %arg0, %c0_i32, %c0_i32_0 : i32, i32, i32
  }
  func.func @transform_1(%arg0: i32) -> (i32, i32) {
    %c0_i32 = arith.constant 0 : i32
    %c0_i32_0 = arith.constant 0 : i32
    %c0_i32_1 = arith.constant 0 : i32
    return %c0_i32, %c0_i32_0 : i32, i32
  }
  func.func @transform_2(%arg0: i32) -> (i32, i32) {
    %c0_i32 = arith.constant 0 : i32
    %c0_i32_0 = arith.constant 0 : i32
    return %arg0, %c0_i32 : i32, i32
  }
}

</mosaic_0001>

<bundles_post_ra>
// kernel: lenet_forward.1
= control target key start
LH: loop header
LB: loop body
LE: loop exit
PB: predicated region body
PF: predicated region fallthrough
CT: control target
= control target key end

     0   :  { %7 = vsyncpa [#allocation5], 0  ;;  %s2237_s0 = inlined_call_operand.vmem [shape: f32[2,28,28], index: 0, kind: input, shape index: {}]   ;;  %s2238_s1 = inlined_call_operand.hbm [shape: f32[1480,128], index: 1, kind: input, shape index: {}]   ;;  %s2239_s2 = inlined_call_operand.hbm [shape: f32[2,10], index: 2, kind: output, shape index: {}]  }
   0x1   :  { %8 = vsyncpa [#allocation6], 0  ;;  %s15_s11 = sshll.u32 %s2238_s1, 4  ;;  %s1493_s12 = smov [#allocation4]   ;;  %s16_s11 = int_to_ptr.hbm [resolvable:$true] %s15_s11 }
   0x2   :  { %s17_s13 = sshll.u32 %s1493_s12, 4  ;;  %s1494_s14 = smov 128   ;;  %s18_s13 = int_to_ptr.vmem [resolvable:$true] %s17_s13 }
   0x3   :  { %s1495_s15 = smov 8  }
   0x4   :  { %23 = dma.hbm_to_vmem [thread:$0]  %s16_s11, 23680, %s18_s13, [#allocation5], %s1494_s14, %s1494_s14, %s1495_s15  }
   0x5   :  { %1489 = dma.done.wait [#allocation5], 23680  }
   0x6   :  { %1490 = vsyncadd [#allocation5], 4294943616  ;;  %v28_v0 = vld [vmem:[%s2237_s0] ss:$2 sm:$0xff]  ;;  %v1533_v3 = vld [vmem:[%s2237_s0 + $0x1] ss:$2 sm:$0xff] }
   0x7   :  { %v39_v1 = vrot.slane %v28_v0, 4  ;;  %97 = vst [vmem:[#allocation1] ss:$2 sm:$0xff] %v28_v0  ;;  %v1342_v2 = vld [vmem:[%s2237_s0 + $0x10] ss:$2 sm:$0xf] }
   0x8   :  { %v1343_v4 = vld [vmem:[%s2237_s0 + $0x20] ss:$2 sm:$0xff]  ;;  %101 = vst [vmem:[#allocation1 + $0x10] ss:$2 sm:$0xff] %v1342_v2  ;;  %v53_v7 = vrot.slane %v1533_v3, 4  ;;  %s1496_s19 = smov 28  }
   0x9   :  { %99 = vst [vmem:[#allocation1 + $0x1] ss:$2 sm:$0xff] %v39_v1  ;;  %v40_v5 = vrot.slane %v1343_v4, 4  ;;  %v1344_v6 = vld [vmem:[%s2237_s0 + $0x30] ss:$2 sm:$0xf] }
   0xa   :  { %103 = vst [vmem:[#allocation1 + $0x11] ss:$2 sm:$0xff] %v1343_v4  ;;  %v1550_v9 = vld [vmem:[%s2237_s0 + $0x2] ss:$2 sm:$0xff]  ;;  %v1560_v11 = vld [vmem:[%s2237_s0 + $0x21] ss:$2 sm:$0xff] }
   0xb   :  { %105 = vst [vmem:[#allocation1 + $0x20] ss:$2 sm:$0xff] %v40_v5  ;;  %v1555_v10 = vld [vmem:[%s2237_s0 + $0x11] ss:$2 sm:$0xf]  ;;  %v54_v12 = vrot.slane %v1560_v11, 4 }
   0xc   :  { %107 = vst [vmem:[#allocation1 + $0x21] ss:$2 sm:$0xff] %v1344_v6  ;;  %v67_v14 = vrot.slane %v1550_v9, 4  ;;  %v1573_v16 = vld [vmem:[%s2237_s0 + $0x31] ss:$2 sm:$0xf] }
   0xd   :  { %v1584_v18 = vld [vmem:[%s2237_s0 + $0x3] ss:$2 sm:$0xff]  ;;  %v1350_v19 = vld [vmem:[%s2237_s0 + $0x12] ss:$2 sm:$0xf]  ;;  %s1497_s23 = smov 56  }
   0xe   :  { %v1592_v20 = vld [vmem:[%s2237_s0 + $0x22] ss:$2 sm:$0xff]  ;;  %v81_v22 = vrot.slane %v1584_v18, 4  ;;  %v1352_v26 = vld [vmem:[%s2237_s0 + $0x32] ss:$2 sm:$0xf] }
   0xf   :  { %v68_v24 = vrot.slane %v1592_v20, 4  ;;  %v1608_v27 = vld [vmem:[%s2237_s0 + $0x4] ss:$2 sm:$0xff]  ;;  %v1354_v29 = vld [vmem:[%s2237_s0 + $0x13] ss:$2 sm:$0xf] }
  0x10   :  { %v1542_v8 = vld.sshfl [vmem:[#allocation1] sm:$0xff pattern:$0x75316420]  ;;  %v95_v32 = vrot.slane %v1608_v27, 4  ;;  %s1498_s26 = smov 112   ;;  %s1499_s29 = smov 84  }
  0x11   :  { %114 = vst [vmem:[#allocation1] ss:$2 sm:$0xff] %v1533_v3  ;;  %v1563_v13 = vld.sshfl [vmem:[#allocation1 + $0x10] sm:$0xff pattern:$0x75316420]  ;;  %v1688_v4 = vld [vmem:[#allocation4 + $0x78] sm:$0xff] }
  0x12   :  { %116 = vst [vmem:[#allocation1 + $0x1] ss:$2 sm:$0xff] %v53_v7  ;;  %v1618_v30 = vld [vmem:[%s2237_s0 + $0x23] ss:$2 sm:$0xff]  ;;  %v1359_v39 = vld [vmem:[%s2237_s0 + $0x24] ss:$2 sm:$0xff]  ;;  %404 = vmatpush.msra.mxu0 %v1688_v4 }
  0x13   :  { %v1566_v15 = vld.sshfl [vmem:[#allocation1 + $0x20] sm:$0xff pattern:$0x75316420]  ;;  %118 = vst [vmem:[#allocation1 + $0x10] ss:$2 sm:$0xff] %v1555_v10  ;;  %v82_v34 = vrot.slane %v1618_v30, 4 }
  0x14   :  { %120 = vst [vmem:[#allocation1 + $0x11] ss:$2 sm:$0xff] %v1560_v11  ;;  %v1356_v36 = vld [vmem:[%s2237_s0 + $0x33] ss:$2 sm:$0xf]  ;;  %v96_v42 = vrot.slane %v1359_v39, 4 }
  0x15   :  { %122 = vst [vmem:[#allocation1 + $0x20] ss:$2 sm:$0xff] %v54_v12  ;;  %v1358_v38 = vld [vmem:[%s2237_s0 + $0x14] ss:$2 sm:$0xf]  ;;  %v1692_v6 = vld [vmem:[#allocation4 + $0x70] sm:$0xff] }
  0x16   :  { %124 = vst [vmem:[#allocation1 + $0x21] ss:$2 sm:$0xff] %v1573_v16  ;;  %v1360_v43 = vld [vmem:[%s2237_s0 + $0x34] ss:$2 sm:$0xf]  ;;  %405 = vmatpush.msra.mxu0 %v1692_v6  ;;  %vm400_vm0 = vcmask 1043456  }
  0x17   :  { %v1361_v56 = vld [vmem:[%s2237_s0 + $0x5] ss:$2 sm:$0xff]  ;;  %v1362_v61 = vld [vmem:[%s2237_s0 + $0x15] ss:$2 sm:$0xf]  ;;  %vm393_vm1 = vcmask 97280  }
  0x18   :  { %v234_v58 = vrot.slane %v1361_v56, 4  ;;  %v1363_v62 = vld [vmem:[%s2237_s0 + $0x25] ss:$2 sm:$0xff]  ;;  %v1364_v2 = vld [vmem:[%s2237_s0 + $0x35] ss:$2 sm:$0xf] }
  0x19   :  { %v125_v17 = vld.sshfl [vmem:[#allocation1] sm:$0xff pattern:$0x75316420]  ;;  %v235_v1 = vrot.slane %v1363_v62, 4  ;;  %v1690_v5 = vld [vmem:[#allocation4 + $0x108] sm:$0xff]  ;;  %vm206_vm2 = vcmask 228352  }
  0x1a   :  { %137 = vst [vmem:[#allocation1] ss:$2 sm:$0xff] %v1550_v9  ;;  %459 = vmatpush.msra.mxu2 %v1690_v5  ;;  %vm210_vm3 = vcmask 457728   ;;  %vm214_vm4 = vcmask 687104   ;;  %vm218_vm5 = vcmask 916480   ;;  %vm663_vm6 = vcmask 588800  }
  0x1b   :  { %139 = vst [vmem:[#allocation1 + $0x1] ss:$2 sm:$0xff] %v67_v14  ;;  %v126_v21 = vld.sshfl [vmem:[#allocation1 + $0x10] sm:$0xff pattern:$0x75316420]  ;;  %vm665_vm7 = vcmask 584704  }
  0x1c   :  { %141 = vst [vmem:[#allocation1 + $0x10] ss:$2 sm:$0xff] %v1350_v19  ;;  %v1401_v28 = vpack.i.bf16 %v126_v21, %v125_v17  ;;  %v1713_v17 = vld [vmem:[#allocation4 + $0xe8] sm:$0xff]  ;;  %v1721_v21 = vld [vmem:[#allocation4 + $0xe0] sm:$0xff]  ;;  %s1500_s0 = smov 72   ;;  %s1501_s10 = smov 16  }
  0x1d   :  { %143 = vst [vmem:[#allocation1 + $0x11] ss:$2 sm:$0xff] %v1592_v20  ;;  %v1598_v25 = vld.sshfl [vmem:[#allocation1 + $0x20] sm:$0xff pattern:$0x75316420]  ;;  %s1502_s11 = smov 88  }
  0x1e   :  { %145 = vst [vmem:[#allocation1 + $0x20] ss:$2 sm:$0xff] %v68_v24  ;;  %1402 = vrot.lane.b32.xlu2 %v1401_v28, %s1496_s19  ;;  %v1739_v28 = vld [vmem:[#allocation4 + $0xc8] sm:$0xff]  ;;  %s1503_s12 = smov 32   ;;  %vm732_vm8 = vcmask 130048   ;;  %vm734_vm9 = vcmask 719872  }
  0x1f   :  { %147 = vst [vmem:[#allocation1 + $0x21] ss:$2 sm:$0xff] %v1352_v26  ;;  %vm736_vm10 = vcmask 261120   ;;  %vm871_vm11 = vcmask 850944   ;;  %vm1128_vm12 = vcmask 519168   ;;  %vm1142_vm13 = vcmask 1041409  }
  0x20   :  { %s1504_s13 = smov 64   ;;  %vm1164_vm14 = vcmask 523264   ;;  %vm1259_vm15 = vcmask 982016   ;;  %s1505_s14 = smov [#allocation7]  }
  0x21   :  { %s1330_s15 = sshll.u32 %s1505_s14, 4  ;;  %s1332_s18 = sshll.u32 %s2239_s2, 4  ;;  %s1331_s15 = int_to_ptr.vmem [resolvable:$true] %s1330_s15  ;;  %s1333_s18 = int_to_ptr.hbm [resolvable:$true] %s1332_s18 }
  0x22   :  { %v148_v23 = vld.sshfl [vmem:[#allocation1] sm:$0xff pattern:$0x75316420] }
  0x23   :  { %160 = vst [vmem:[#allocation1] ss:$2 sm:$0xff] %v1584_v18 }
  0x24   :  { %162 = vst [vmem:[#allocation1 + $0x1] ss:$2 sm:$0xff] %v81_v22  ;;  %v149_v31 = vld.sshfl [vmem:[#allocation1 + $0x10] sm:$0xff pattern:$0x75316420] }
  0x25   :  { %164 = vst [vmem:[#allocation1 + $0x10] ss:$2 sm:$0xff] %v1354_v29  ;;  %v1406_v35 = vpack.i.bf16 %v149_v31, %v148_v23  ;;  %v366_v23 = vld [vmem:[#allocation4 + $0x48] sm:$0xff] }
  0x26   :  { %166 = vst [vmem:[#allocation1 + $0x11] ss:$2 sm:$0xff] %v1618_v30  ;;  %v1628_v37 = vld.sshfl [vmem:[#allocation1 + $0x20] sm:$0xff pattern:$0x75316420]  ;;  %v362_v31 = vld [vmem:[#allocation4 + $0x28] sm:$0xff] }
  0x27   :  { %168 = vst [vmem:[#allocation1 + $0x20] ss:$2 sm:$0xff] %v82_v34  ;;  %1407 = vrot.lane.b32.xlu2 %v1406_v35, %s1497_s23  ;;  %v374_v35 = vld [vmem:[#allocation4 + $0x88] sm:$0xf] }
  0x28   :  { %170 = vst [vmem:[#allocation1 + $0x21] ss:$2 sm:$0xff] %v1356_v36  ;;  %1365 = vmatpush.msk.msra.mxu1 %vm400_vm0, %v374_v35 }
  0x2b   :  { %v171_v33 = vld.sshfl [vmem:[#allocation1] sm:$0xff pattern:$0x75316420] }
  0x2c   :  { %183 = vst [vmem:[#allocation1] ss:$2 sm:$0xff] %v1608_v27 }
  0x2d   :  { %185 = vst [vmem:[#allocation1 + $0x1] ss:$2 sm:$0xff] %v95_v32  ;;  %v172_v40 = vld.sshfl [vmem:[#allocation1 + $0x10] sm:$0xff pattern:$0x75316420] }
  0x2e   :  { %187 = vst [vmem:[#allocation1 + $0x10] ss:$2 sm:$0xff] %v1358_v38  ;;  %v1411_v48 = vpack.i.bf16 %v172_v40, %v171_v33  ;;  %v361_v33 = vld [vmem:[#allocation4 + $0x20] sm:$0xff]  ;;  %v391_v40 = vld [vmem:[#allocation4 + $0x110] sm:$0xff] }
  0x2f   :  { %189 = vst [vmem:[#allocation1 + $0x11] ss:$2 sm:$0xff] %v1359_v39  ;;  %v1644_v44 = vld.sshfl [vmem:[#allocation1 + $0x20] sm:$0xff pattern:$0x75316420] }
  0x30   :  { %191 = vst [vmem:[#allocation1 + $0x20] ss:$2 sm:$0xff] %v96_v42 }
  0x31   :  { %193 = vst [vmem:[#allocation1 + $0x21] ss:$2 sm:$0xff] %v1360_v43 }
  0x34   :  { %v194_v41 = vld.sshfl [vmem:[#allocation1] sm:$0xff pattern:$0x75316420] }
  0x35   :  { %197 = vrot.lane.b32.xlu0 %v194_v41, %s1498_s26  ;;  %236 = vst [vmem:[#allocation1] ss:$2 sm:$0xff] %v1533_v3  ;;  %v359_v41 = vld [vmem:[#allocation4 + $0x10] sm:$0xff] }
  0x36   :  { %238 = vst [vmem:[#allocation1 + $0x1] ss:$2 sm:$0xff] %v53_v7  ;;  %v195_v45 = vld.sshfl [vmem:[#allocation1 + $0x10] sm:$0xff pattern:$0x75316420] }
  0x37   :  { %240 = vst [vmem:[#allocation1 + $0x10] ss:$2 sm:$0xff] %v1555_v10  ;;  %v1698_v10 = vld [vmem:[#allocation4 + $0x68] sm:$0xff] }
  0x38   :  { %242 = vst [vmem:[#allocation1 + $0x11] ss:$2 sm:$0xff] %v1560_v11  ;;  %v196_v47 = vld.sshfl [vmem:[#allocation1 + $0x20] sm:$0xff pattern:$0x75316420]  ;;  %v1700_v11 = vld [vmem:[#allocation4 + $0xf8] sm:$0xff]  ;;  %406 = vmatpush.msra.mxu0 %v1698_v10 }
  0x39   :  { %201 = vrot.lane.b32.xlu1 %v196_v47, %s1498_s26  ;;  %244 = vst [vmem:[#allocation1 + $0x20] ss:$2 sm:$0xff] %v54_v12  ;;  %v1705_v12 = vld [vmem:[#allocation4 + $0x60] sm:$0xff]  ;;  %v1766_v47 = vld [vmem:[#allocation4 + $0x90] sm:$0xff] }
  0x3a   :  { %246 = vst [vmem:[#allocation1 + $0x21] ss:$2 sm:$0xff] %v1573_v16  ;;  %v1711_v16 = vld [vmem:[#allocation4 + $0x58] sm:$0xff]  ;;  %407 = vmatpush.msra.mxu0 %v1705_v12 }
  0x3c   :  { %408 = vmatpush.msra.mxu0 %v1711_v16 }
  0x3d   :  { %199 = vrot.lane.b32.xlu0 %v195_v45, %s1498_s26  ;;  %v1649_v46 = vld.sshfl [vmem:[#allocation1] sm:$0xff pattern:$0x75316420]  ;;  %v357_v45 = vld [vmem:[#allocation4] sm:$0xff] }
  0x3e   :  { %253 = vst [vmem:[#allocation1] ss:$2 sm:$0xff] %v1550_v9  ;;  %v1696_v9 = vld [vmem:[#allocation4 + $0x100] sm:$0xff] }
  0x3f   :  { %255 = vst [vmem:[#allocation1 + $0x1] ss:$2 sm:$0xff] %v67_v14  ;;  %v1658_v49 = vld.sshfl [vmem:[#allocation1 + $0x10] sm:$0xff pattern:$0x75316420]  ;;  %460 = vmatpush.msra.mxu2 %v1696_v9  ;;  %v1707_v14 = vld [vmem:[#allocation4 + $0xf0] sm:$0xff] }
  0x40   :  { %257 = vst [vmem:[#allocation1 + $0x10] ss:$2 sm:$0xff] %v1350_v19 }
  0x41   :  { %259 = vst [vmem:[#allocation1 + $0x11] ss:$2 sm:$0xff] %v1592_v20  ;;  %v1665_v51 = vld.sshfl [vmem:[#allocation1 + $0x20] sm:$0xff pattern:$0x75316420]  ;;  %461 = vmatpush.msra.mxu2 %v1700_v11 }
  0x42   :  { %261 = vst [vmem:[#allocation1 + $0x20] ss:$2 sm:$0xff] %v68_v24  ;;  %v1719_v20 = vld [vmem:[#allocation4 + $0x50] sm:$0xff]  ;;  %v1734_v24 = vld [vmem:[#allocation4 + $0xd8] sm:$0xff] }
  0x43   :  { %263 = vst [vmem:[#allocation1 + $0x21] ss:$2 sm:$0xff] %v1352_v26  ;;  %462 = vmatpush.msra.mxu2 %v1707_v14  ;;  %409 = vmatpush.msra.mxu0 %v1719_v20  ;;  %v1737_v26 = vld [vmem:[#allocation4 + $0xd0] sm:$0xff] }
  0x45   :  { %1412 = vrot.lane.b32.xlu0 %v1411_v48, %s1499_s29  ;;  %463 = vmatpush.msra.mxu2 %v1713_v17 }
  0x46   :  { %v264_v50 = vld.sshfl [vmem:[#allocation1] sm:$0xff pattern:$0x75316420]  ;;  %410 = vmatpush.msra.mxu0 %v366_v23 }
  0x47   :  { %276 = vst [vmem:[#allocation1] ss:$2 sm:$0xff] %v1584_v18  ;;  %v1416_v52 = vpack.i.bf16 %v264_v50, %v1598_v25  ;;  %464 = vmatpush.msra.mxu2 %v1721_v21  ;;  %v365_v25 = vld [vmem:[#allocation4 + $0x40] sm:$0xff] }
  0x48   :  { %278 = vst [vmem:[#allocation1 + $0x1] ss:$2 sm:$0xff] %v81_v22  ;;  %v265_v53 = vld.sshfl [vmem:[#allocation1 + $0x10] sm:$0xff pattern:$0x75316420]  ;;  %411 = vmatpush.msra.mxu0 %v365_v25 }
  0x49   :  { %280 = vst [vmem:[#allocation1 + $0x10] ss:$2 sm:$0xff] %v1354_v29  ;;  %465 = vmatpush.msra.mxu2 %v1734_v24  ;;  %v363_v29 = vld [vmem:[#allocation4 + $0x30] sm:$0xff] }
  0x4a   :  { %282 = vst [vmem:[#allocation1 + $0x11] ss:$2 sm:$0xff] %v1618_v30  ;;  %v266_v55 = vld.sshfl [vmem:[#allocation1 + $0x20] sm:$0xff pattern:$0x75316420]  ;;  %v1742_v30 = vld [vmem:[#allocation4 + $0xc0] sm:$0xff] }
  0x4b   :  { %284 = vst [vmem:[#allocation1 + $0x20] ss:$2 sm:$0xff] %v82_v34  ;;  %466 = vmatpush.msra.mxu2 %v1737_v26  ;;  %v1749_v34 = vld [vmem:[#allocation4 + $0xb0] sm:$0xff] }
  0x4c   :  { %286 = vst [vmem:[#allocation1 + $0x21] ss:$2 sm:$0xff] %v1356_v36  ;;  %v360_v36 = vld [vmem:[#allocation4 + $0x18] sm:$0xff] }
  0x4d   :  { %1417 = vrot.lane.b32.xlu0 %v1416_v52, %s1496_s19  ;;  %467 = vmatpush.msra.mxu2 %v1739_v28 }
  0x4f   :  { %v287_v54 = vld.sshfl [vmem:[#allocation1] sm:$0xff pattern:$0x75316420]  ;;  %468 = vmatpush.msra.mxu2 %v1742_v30 }
  0x50   :  { %299 = vst [vmem:[#allocation1] ss:$2 sm:$0xff] %v1608_v27  ;;  %v1421_v19 = vpack.i.bf16 %v287_v54, %v1628_v37  ;;  %v364_v27 = vld [vmem:[#allocation4 + $0x38] sm:$0xff]  ;;  %v1752_v37 = vld [vmem:[#allocation4 + $0xa8] sm:$0xff] }
  0x51   :  { %301 = vst [vmem:[#allocation1 + $0x1] ss:$2 sm:$0xff] %v95_v32  ;;  %v288_v57 = vld.sshfl [vmem:[#allocation1 + $0x10] sm:$0xff pattern:$0x75316420]  ;;  %412 = vmatpush.msra.mxu0 %v364_v27  ;;  %v1746_v32 = vld [vmem:[#allocation4 + $0xb8] sm:$0xff] }
  0x52   :  { %303 = vst [vmem:[#allocation1 + $0x10] ss:$2 sm:$0xff] %v1358_v38  ;;  %469 = vmatpush.msra.mxu2 %v1746_v32  ;;  %v392_v38 = vld [vmem:[#allocation4 + $0x118] sm:$0xf] }
  0x53   :  { %305 = vst [vmem:[#allocation1 + $0x11] ss:$2 sm:$0xff] %v1359_v39  ;;  %v289_v60 = vld.sshfl [vmem:[#allocation1 + $0x20] sm:$0xff pattern:$0x75316420]  ;;  %413 = vmatpush.msra.mxu0 %v363_v29  ;;  %v373_v39 = vld [vmem:[#allocation4 + $0x80] sm:$0xff]  ;;  %1369 = vmatpush.msk.msra.mxu3 %vm400_vm0, %v392_v38 }
  0x54   :  { %307 = vst [vmem:[#allocation1 + $0x20] ss:$2 sm:$0xff] %v96_v42  ;;  %470 = vmatpush.msra.mxu2 %v1749_v34  ;;  %445 = vmatpush.msra.mxu1 %v373_v39  ;;  %v1756_v42 = vld [vmem:[#allocation4 + $0xa0] sm:$0xff] }
  0x55   :  { %269 = vrot.lane.b32.xlu0 %v265_v53, %s1496_s19  ;;  %309 = vst [vmem:[#allocation1 + $0x21] ss:$2 sm:$0xff] %v1360_v43  ;;  %414 = vmatpush.msra.mxu0 %v362_v31  ;;  %v358_v43 = vld [vmem:[#allocation4 + $0x8] sm:$0xff] }
  0x56   :  { %471 = vmatpush.msra.mxu2 %v1752_v37  ;;  %500 = vmatpush.msra.mxu3 %v391_v40 }
  0x57   :  { %415 = vmatpush.msra.mxu0 %v361_v33  ;;  %520 = vmatpush.msrb.mxu1 %v1688_v4 }
  0x58   :  { %v310_v59 = vld.sshfl [vmem:[#allocation1] sm:$0xff pattern:$0x75316420]  ;;  %472 = vmatpush.msra.mxu2 %v1756_v42  ;;  %1373 = vmatpush.msk.msrb.mxu3 %vm400_vm0, %v374_v35 }
  0x59   :  { %322 = vst [vmem:[#allocation1] ss:$2 sm:$0xff] %v1361_v56  ;;  %v1426_v22 = vpack.i.bf16 %v310_v59, %v1644_v44  ;;  %416 = vmatpush.msra.mxu0 %v360_v36  ;;  %521 = vmatpush.msrb.mxu1 %v1692_v6  ;;  %v1763_v44 = vld [vmem:[#allocation4 + $0x98] sm:$0xff] }
  0x5a   :  { %324 = vst [vmem:[#allocation1 + $0x1] ss:$2 sm:$0xff] %v234_v58  ;;  %v311_v63 = vld.sshfl [vmem:[#allocation1 + $0x10] sm:$0xff pattern:$0x75316420]  ;;  %473 = vmatpush.msra.mxu2 %v1763_v44  ;;  %561 = vmatpush.msrb.mxu3 %v373_v39 }
  0x5b   :  { %326 = vst [vmem:[#allocation1 + $0x10] ss:$2 sm:$0xff] %v1362_v61  ;;  %417 = vmatpush.msra.mxu0 %v359_v41  ;;  %522 = vmatpush.msrb.mxu1 %v1698_v10 }
  0x5c   :  { %328 = vst [vmem:[#allocation1 + $0x11] ss:$2 sm:$0xff] %v1363_v62  ;;  %v312_v3 = vld.sshfl [vmem:[#allocation1 + $0x20] sm:$0xff pattern:$0x75316420]  ;;  %474 = vmatpush.msra.mxu2 %v1766_v47 }
  0x5d   :  { %271 = vrot.lane.b32.xlu0 %v266_v55, %s1496_s19  ;;  %330 = vst [vmem:[#allocation1 + $0x20] ss:$2 sm:$0xff] %v235_v1  ;;  %418 = vmatpush.msra.mxu0 %v358_v43 }
  0x5e   :  { %332 = vst [vmem:[#allocation1 + $0x21] ss:$2 sm:$0xff] %v1364_v2  ;;  %523 = vmatpush.msrb.mxu1 %v1705_v12 }
  0x5f   :  { %419 = vmatpush.msra.mxu0 %v357_v45 }
  0x60   :  { %524 = vmatpush.msrb.mxu1 %v1711_v16 }
  0x61   :  { %v333_v0 = vld.sshfl [vmem:[#allocation1] sm:$0xff pattern:$0x75316420]  ;;  %1377 = vmatpush.msk.msrb.mxu0 %vm400_vm0, %v392_v38 }
  0x62   :  { %336 = vrot.lane.b32.xlu1 %v333_v0, %s1498_s26  ;;  %525 = vmatpush.msrb.mxu1 %v1719_v20 }
  0x63   :  { %v334_v7 = vld.sshfl [vmem:[#allocation1 + $0x10] sm:$0xff pattern:$0x75316420]  ;;  %613 = vmatpush.msrb.mxu0 %v391_v40 }
  0x64   :  { %526 = vmatpush.msrb.mxu1 %v366_v23 }
  0x65   :  { %v335_v18 = vld.sshfl [vmem:[#allocation1 + $0x20] sm:$0xff pattern:$0x75316420] }
  0x66   :  { %340 = vrot.lane.b32.xlu2 %v335_v18, %s1498_s26  ;;  %527 = vmatpush.msrb.mxu1 %v365_v25 }
  0x68   :  { %528 = vmatpush.msrb.mxu1 %v364_v27 }
  0x6a   :  { %338 = vrot.lane.b32.xlu1 %v334_v7, %s1498_s26  ;;  %529 = vmatpush.msrb.mxu1 %v363_v29 }
  0x6c   :  { %530 = vmatpush.msrb.mxu1 %v362_v31 }
  0x6e   :  { %1427 = vrot.lane.b32.xlu2 %v1426_v22, %s1499_s29  ;;  %531 = vmatpush.msrb.mxu1 %v361_v33 }
  0x70   :  { %532 = vmatpush.msrb.mxu1 %v360_v36 }
  0x72   :  { %1422 = vrot.lane.b32.xlu1 %v1421_v19, %s1497_s23  ;;  %533 = vmatpush.msrb.mxu1 %v359_v41 }
  0x74   :  { %534 = vmatpush.msrb.mxu1 %v358_v43 }
  0x76   :  { %315 = vrot.lane.b32.xlu2 %v311_v63, %s1499_s29  ;;  %535 = vmatpush.msrb.mxu1 %v357_v45 }
  0x78   :  { %v1403_v48 = vpop.permute.xlu2 %1402 }
  0x79   :  { %v1404_v53 = vunpack.i.l.bf16 %v1403_v48  ;;  %v1405_v58 = vunpack.i.h.bf16 %v1403_v48 }
  0x7a   :  { %292 = vrot.lane.b32.xlu1 %v288_v57, %s1497_s23 }
  0x7b   :  { %v207_v56 = vsel %vm206_vm2, %v1542_v8, %v1404_v53  ;;  %v208_v8 = vsel %vm206_vm2, %v1563_v13, %v1405_v58 }
  0x7e   :  { %317 = vrot.lane.b32.xlu2 %v312_v3, %s1499_s29 }
  0x81   :  { %v1408_v54 = vpop.permute.xlu2 %1407 }
  0x82   :  { %294 = vrot.lane.b32.xlu1 %v289_v60, %s1497_s23  ;;  %v1409_v55 = vunpack.i.l.bf16 %v1408_v54  ;;  %v1410_v62 = vunpack.i.h.bf16 %v1408_v54 }
  0x84   :  { %v211_v60 = vsel %vm210_vm3, %v207_v56, %v1409_v55  ;;  %v212_v2 = vsel %vm210_vm3, %v208_v8, %v1410_v62  ;;  %v1436_v62 = vld [vmem:[#allocation4 + $0x5c0] ss:$0 sm:$0xff] }
  0xa7   :  { %v198_v50 = vpop.permute.xlu0 %197 }
  0xa8   :  { %1366 = vmatmul.msk.f32.vlgmr.msra.gmra.mxu1 %vm393_vm1, %v198_v50  ;;  %1370 = vmatmul.msk.f32.vlgmr.msra.gmra.mxu3 %vm393_vm1, %v198_v50 }
  0xa9   :  { %572 = vmatpush.msra.mxu3 %v1690_v5 }
  0xab   :  { %573 = vmatpush.msra.mxu3 %v1696_v9  ;;  %v202_v57 = vpop.permute.xlu1 %201 }
  0xad   :  { %574 = vmatpush.msra.mxu3 %v1700_v11 }
  0xaf   :  { %v200_v52 = vpop.permute.xlu0 %199  ;;  %575 = vmatpush.msra.mxu3 %v1707_v14 }
  0xb0   :  { %1367 = vmatmul.msk.f32.gmra.mxu1 %vm393_vm1, %v200_v52  ;;  %1371 = vmatmul.msk.f32.gmra.mxu3 %vm393_vm1, %v200_v52 }
  0xb1   :  { %576 = vmatpush.msra.mxu3 %v1713_v17 }
  0xb3   :  { %577 = vmatpush.msra.mxu3 %v1721_v21 }
  0xb5   :  { %578 = vmatpush.msra.mxu3 %v1734_v24 }
  0xb7   :  { %v1413_v59 = vpop.permute.xlu0 %1412  ;;  %579 = vmatpush.msra.mxu3 %v1737_v26 }
  0xb8   :  { %v1414_v61 = vunpack.i.l.bf16 %v1413_v59  ;;  %1368 = vmatmul.msk.f32.gmra.mxu1 %vm393_vm1, %v202_v57  ;;  %1372 = vmatmul.msk.f32.gmra.mxu3 %vm393_vm1, %v202_v57  ;;  %v1415_v1 = vunpack.i.h.bf16 %v1413_v59 }
  0xb9   :  { %580 = vmatpush.msra.mxu3 %v1739_v28 }
  0xba   :  { %v215_v63 = vsel %vm214_vm4, %v211_v60, %v1414_v61  ;;  %v216_v3 = vsel %vm214_vm4, %v212_v2, %v1415_v1 }
  0xbb   :  { %v219_v0 = vsel %vm218_vm5, %v215_v63, %v198_v50  ;;  %581 = vmatpush.msra.mxu3 %v1742_v30  ;;  %v220_v13 = vsel %vm218_vm5, %v216_v3, %v200_v52 }
  0xbc   :  { %420 = vmatmul.f32.vlgmr.msra.gmra.mxu0 %v219_v0  ;;  %475 = vmatmul.f32.vlgmr.msra.gmra.mxu2 %v219_v0 }
  0xbd   :  { %582 = vmatpush.msra.mxu3 %v1746_v32 }
  0xbf   :  { %583 = vmatpush.msra.mxu3 %v1749_v34  ;;  %v1418_v6 = vpop.permute.xlu0 %1417 }
  0xc0   :  { %v341_v5 = vpop.permute.xlu2 %340  ;;  %v1420_v9 = vunpack.i.h.bf16 %v1418_v6  ;;  %v1419_v10 = vunpack.i.l.bf16 %v1418_v6 }
  0xc1   :  { %584 = vmatpush.msra.mxu3 %v1752_v37 }
  0xc2   :  { %v345_v12 = vsel %vm206_vm2, %v1649_v46, %v1420_v9  ;;  %v209_v14 = vsel %vm206_vm2, %v1566_v15, %v1419_v10 }
  0xc3   :  { %585 = vmatpush.msra.mxu3 %v1756_v42 }
  0xc4   :  { %423 = vmatmul.f32.gmra.mxu0 %v220_v13  ;;  %478 = vmatmul.f32.gmra.mxu2 %v220_v13 }
  0xc5   :  { %586 = vmatpush.msra.mxu3 %v1763_v44 }
  0xc7   :  { %587 = vmatpush.msra.mxu3 %v1766_v47  ;;  %v270_v21 = vpop.permute.xlu0 %269 }
  0xc8   :  { %v1428_v11 = vpop.permute.xlu2 %1427  ;;  %v346_v26 = vsel %vm206_vm2, %v1658_v49, %v270_v21 }
  0xc9   :  { %v1430_v17 = vunpack.i.h.bf16 %v1428_v11  ;;  %v1429_v18 = vunpack.i.l.bf16 %v1428_v11 }
  0xcf   :  { %v272_v31 = vpop.permute.xlu0 %271 }
  0xd0   :  { %v316_v27 = vpop.permute.xlu2 %315  ;;  %v347_v33 = vsel %vm206_vm2, %v1665_v51, %v272_v31 }
  0xd4   :  { %v337_v4 = vpop.permute.xlu1 %336 }
  0xd5   :  { %1374 = vmatmul.msk.f32.vlgmr.msrb.gmra.mxu3 %vm393_vm1, %v337_v4 }
  0xd8   :  { %v318_v35 = vpop.permute.xlu2 %317 }
  0xdc   :  { %v339_v7 = vpop.permute.xlu1 %338 }
  0xdd   :  { %1375 = vmatmul.msk.f32.gmra.mxu3 %vm393_vm1, %v339_v7 }
  0xe4   :  { %v1423_v16 = vpop.permute.xlu1 %1422 }
  0xe5   :  { %v1425_v19 = vunpack.i.h.bf16 %v1423_v16  ;;  %v1424_v20 = vunpack.i.l.bf16 %v1423_v16  ;;  %1376 = vmatmul.msk.f32.gmra.mxu3 %vm393_vm1, %v341_v5 }
  0xe7   :  { %v213_v22 = vsel %vm210_vm3, %v209_v14, %v1424_v20  ;;  %v348_v23 = vsel %vm210_vm3, %v345_v12, %v1425_v19 }
  0xe8   :  { %v217_v24 = vsel %vm214_vm4, %v213_v22, %v1429_v18  ;;  %v351_v25 = vsel %vm214_vm4, %v348_v23, %v1430_v17 }
  0xe9   :  { %v221_v46 = vsel %vm218_vm5, %v217_v24, %v202_v57  ;;  %v354_v15 = vsel %vm218_vm5, %v351_v25, %v337_v4 }
  0xea   :  { %426 = vmatmul.f32.gmra.mxu0 %v221_v46  ;;  %481 = vmatmul.f32.gmra.mxu2 %v221_v46 }
  0xeb   :  { %536 = vmatmul.f32.vlgmr.msrb.gmra.mxu1 %v354_v15 }
  0xec   :  { %v293_v28 = vpop.permute.xlu1 %292 }
  0xed   :  { %v349_v29 = vsel %vm210_vm3, %v346_v26, %v293_v28  ;;  %588 = vmatmul.f32.vlgmr.msra.gmra.mxu3 %v354_v15 }
  0xee   :  { %v352_v30 = vsel %vm214_vm4, %v349_v29, %v316_v27 }
  0xef   :  { %v355_v32 = vsel %vm218_vm5, %v352_v30, %v339_v7 }
  0xf2   :  { %1378 = vmatmul.msk.f32.vlgmr.msrb.gmra.mxu0 %vm393_vm1, %v337_v4 }
  0xf3   :  { %539 = vmatmul.f32.gmra.mxu1 %v355_v32 }
  0xf4   :  { %v295_v34 = vpop.permute.xlu1 %294 }
  0xf5   :  { %v350_v49 = vsel %vm210_vm3, %v347_v33, %v295_v34  ;;  %591 = vmatmul.f32.gmra.mxu3 %v355_v32 }
  0xf6   :  { %v353_v36 = vsel %vm214_vm4, %v350_v49, %v318_v35 }
  0xf7   :  { %v356_v37 = vsel %vm218_vm5, %v353_v36, %v341_v5 }
  0xfa   :  { %1379 = vmatmul.msk.f32.gmra.mxu0 %vm393_vm1, %v339_v7 }
  0xfb   :  { %542 = vmatmul.f32.gmra.mxu1 %v356_v37 }
  0xfd   :  { %594 = vmatmul.f32.gmra.mxu3 %v356_v37 }
 0x102   :  { %1380 = vmatmul.msk.f32.gmra.mxu0 %vm393_vm1, %v341_v5 }
 0x125   :  { %v447_v40 = vpop.f32.mrf.mxu1 }
 0x12b   :  { %v502_v38 = vpop.f32.mrf.mxu3 }
 0x12d   :  { %v450_v42 = vpop.f32.mrf.mxu1 }
 0x133   :  { %v505_v39 = vpop.f32.mrf.mxu3 }
 0x135   :  { %v453_v47 = vpop.f32.mrf.mxu1 }
 0x139   :  { %v421_v41 = vpop.f32.mrf.mxu0 }
 0x13a   :  { %v448_v57 = vadd.f32 %v447_v40, %v421_v41 }
 0x13b   :  { %v508_v51 = vpop.f32.mrf.mxu3 }
 0x13f   :  { %v476_v52 = vpop.f32.mrf.mxu2 }
 0x140   :  { %v503_v54 = vadd.f32 %v502_v38, %v476_v52  ;;  %v1851_v52 = vld [vmem:[#allocation4 + $0x190] sm:$0xff] }
 0x141   :  { %v424_v44 = vpop.f32.mrf.mxu0 }
 0x142   :  { %v511_v60 = vmax.f32 %v448_v57, %v503_v54  ;;  %v451_v4 = vadd.f32 %v450_v42, %v424_v44  ;;  %v1856_v54 = vld [vmem:[#allocation4 + $0x180] sm:$0xff] }
 0x147   :  { %v479_v8 = vpop.f32.mrf.mxu2 }
 0x148   :  { %v506_v1 = vadd.f32 %v505_v39, %v479_v8  ;;  %v1878_v8 = vld [vmem:[#allocation4 + $0x278] sm:$0xff] }
 0x14a   :  { %v512_v9 = vmax.f32 %v451_v4, %v506_v1  ;;  %v1886_v1 = vld [vmem:[#allocation4 + $0x270] sm:$0xff]  ;;  %v1898_v4 = vld [vmem:[#allocation4 + $0x268] sm:$0xff] }
 0x158   :  { %v563_v43 = vpop.f32.mrf.mxu3 }
 0x160   :  { %v566_v45 = vpop.f32.mrf.mxu3 }
 0x167   :  { %v427_v48 = vpop.f32.mrf.mxu0 }
 0x168   :  { %v569_v50 = vpop.f32.mrf.mxu3  ;;  %v537_v53 = vpop.f32.mrf.mxu1  ;;  %v454_v21 = vadd.f32 %v453_v47, %v427_v48  ;;  %v1846_v48 = vld [vmem:[#allocation4 + $0x198] sm:$0xff] }
 0x169   :  { %v564_v58 = vadd.f32 %v563_v43, %v537_v53  ;;  %875 = vmatpush.msrb.mxu2 %v1846_v48  ;;  %v1853_v53 = vld [vmem:[#allocation4 + $0x188] sm:$0xff] }
 0x16b   :  { %876 = vmatpush.msrb.mxu2 %v1851_v52 }
 0x16d   :  { %v482_v12 = vpop.f32.mrf.mxu2  ;;  %877 = vmatpush.msrb.mxu2 %v1853_v53 }
 0x16e   :  { %v509_v17 = vadd.f32 %v508_v51, %v482_v12  ;;  %v1918_v12 = vld [vmem:[#allocation4 + $0x2e0] sm:$0xff] }
 0x16f   :  { %v615_v55 = vpop.f32.mrf.mxu0  ;;  %878 = vmatpush.msrb.mxu2 %v1856_v54 }
 0x170   :  { %v589_v56 = vpop.f32.mrf.mxu3  ;;  %v540_v63 = vpop.f32.mrf.mxu1  ;;  %v513_v25 = vmax.f32 %v454_v21, %v509_v17  ;;  %v1927_v17 = vld [vmem:[#allocation4 + $0x258] sm:$0xff]  ;;  %v1940_v21 = vld [vmem:[#allocation4 + $0x250] sm:$0xff] }
 0x171   :  { %v616_v59 = vadd.f32 %v615_v55, %v589_v56  ;;  %v567_v5 = vadd.f32 %v566_v45, %v540_v63  ;;  %v1859_v55 = vld [vmem:[#allocation4 + $0x218] sm:$0xff]  ;;  %v1861_v56 = vld [vmem:[#allocation4 + $0x210] sm:$0xff] }
 0x172   :  { %895 = vmatpush.msra.mxu1 %v1859_v55  ;;  %v1880_v63 = vld [vmem:[#allocation4 + $0x2f8] sm:$0xff] }
 0x173   :  { %v624_v61 = vmax.f32 %v564_v58, %v616_v59  ;;  %v1863_v58 = vld [vmem:[#allocation4 + $0x178] sm:$0xff]  ;;  %v1866_v59 = vld [vmem:[#allocation4 + $0x280] sm:$0xff] }
 0x174   :  { %896 = vmatpush.msra.mxu1 %v1861_v56  ;;  %918 = vmatpush.msra.mxu0 %v1866_v59 }
 0x175   :  { %v627_v0 = vmax.f32 %v511_v60, %v624_v61  ;;  %v1870_v60 = vld [vmem:[#allocation4 + $0x300] sm:$0xff]  ;;  %v1872_v61 = vld [vmem:[#allocation4 + $0x208] sm:$0xff]  ;;  %879 = vmatpush.msrb.mxu2 %v1863_v58 }
 0x176   :  { %935 = vmatpush.msrb.mxu3 %v1870_v60  ;;  %897 = vmatpush.msra.mxu1 %v1872_v61 }
 0x177   :  { %v632_v2 = vadd.f32 %v1436_v62, %v627_v0  ;;  %v618_v3 = vpop.f32.mrf.mxu0  ;;  %v1884_v0 = vld [vmem:[#allocation4 + $0x200] sm:$0xff]  ;;  %919 = vmatpush.msra.mxu0 %v1878_v8 }
 0x178   :  { %v592_v13 = vpop.f32.mrf.mxu3  ;;  %v543_v16 = vpop.f32.mrf.mxu1  ;;  %936 = vmatpush.msrb.mxu3 %v1880_v63  ;;  %898 = vmatpush.msra.mxu1 %v1884_v0 }
 0x179   :  { %v635_v6 = vmax.f32 %v632_v2, 0.0  ;;  %v619_v7 = vadd.f32 %v618_v3, %v592_v13  ;;  %v570_v22 = vadd.f32 %v569_v50, %v543_v16  ;;  %v1888_v2 = vld [vmem:[#allocation4 + $0x168] sm:$0xff]  ;;  %v1892_v3 = vld [vmem:[#allocation4 + $0x2f0] sm:$0xff]  ;;  %v1896_v13 = vld [vmem:[#allocation4 + $0x1f8] sm:$0xff]  ;;  %920 = vmatpush.msra.mxu0 %v1886_v1 }
 0x17a   :  { %937 = vmatpush.msrb.mxu3 %v1892_v3  ;;  %899 = vmatpush.msra.mxu1 %v1896_v13  ;;  %v1924_v16 = vld [vmem:[#allocation4 + $0x150] sm:$0xff] }
 0x17b   :  { %v641_v10 = vrot.slane %v635_v6, 4  ;;  %644 = vst [vmem:[#allocation1] ss:$2 sm:$0xff] %v635_v6  ;;  %v625_v11 = vmax.f32 %v567_v5, %v619_v7  ;;  %v1900_v5 = vld [vmem:[#allocation4 + $0x160] sm:$0xff]  ;;  %v1904_v6 = vld [vmem:[#allocation4 + $0x2e8] sm:$0xff]  ;;  %v1908_v7 = vld [vmem:[#allocation4 + $0x1f0] sm:$0xff]  ;;  %921 = vmatpush.msra.mxu0 %v1898_v4 }
 0x17c   :  { %938 = vmatpush.msrb.mxu3 %v1904_v6  ;;  %900 = vmatpush.msra.mxu1 %v1908_v7 }
 0x17d   :  { %646 = vst [vmem:[#allocation1 + $0x1] ss:$2 sm:$0xff] %v641_v10  ;;  %v628_v14 = vmax.f32 %v512_v9, %v625_v11  ;;  %v1910_v9 = vld [vmem:[#allocation4 + $0x158] sm:$0xff]  ;;  %v1914_v10 = vld [vmem:[#allocation4 + $0x260] sm:$0xff] }
 0x17e   :  { %922 = vmatpush.msra.mxu0 %v1914_v10  ;;  %939 = vmatpush.msrb.mxu3 %v1918_v12 }
 0x17f   :  { %v633_v18 = vadd.f32 %v1436_v62, %v628_v14  ;;  %v621_v19 = vpop.f32.mrf.mxu0  ;;  %v1920_v14 = vld [vmem:[#allocation4 + $0x1e8] sm:$0xff] }
 0x180   :  { %v595_v20 = vpop.f32.mrf.mxu3  ;;  %901 = vmatpush.msra.mxu1 %v1920_v14  ;;  %923 = vmatpush.msra.mxu0 %v1927_v17 }
 0x181   :  { %v636_v23 = vmax.f32 %v633_v18, 0.0  ;;  %v622_v24 = vadd.f32 %v621_v19, %v595_v20  ;;  %v1932_v18 = vld [vmem:[#allocation4 + $0x2d8] sm:$0xff]  ;;  %v1934_v19 = vld [vmem:[#allocation4 + $0x1e0] sm:$0xff]  ;;  %v1936_v20 = vld [vmem:[#allocation4 + $0x148] sm:$0xff] }
 0x182   :  { %940 = vmatpush.msrb.mxu3 %v1932_v18  ;;  %902 = vmatpush.msra.mxu1 %v1934_v19 }
 0x183   :  { %v642_v46 = vrot.slane %v636_v23, 4  ;;  %648 = vst [vmem:[#allocation1 + $0x10] ss:$2 sm:$0xff] %v636_v23  ;;  %v626_v15 = vmax.f32 %v570_v22, %v622_v24  ;;  %v1944_v22 = vld [vmem:[#allocation4 + $0x2d0] sm:$0xff]  ;;  %v1946_v23 = vld [vmem:[#allocation4 + $0x1d8] sm:$0xff]  ;;  %v1948_v24 = vld [vmem:[#allocation4 + $0x140] sm:$0xff]  ;;  %924 = vmatpush.msra.mxu0 %v1940_v21 }
 0x184   :  { %v649_v26 = vld.sshfl [vmem:[#allocation1] sm:$0xff pattern:$0x75316420]  ;;  %941 = vmatpush.msrb.mxu3 %v1944_v22  ;;  %903 = vmatpush.msra.mxu1 %v1946_v23 }
 0x185   :  { %652 = vst [vmem:[#allocation1 + $0x20] ss:$2 sm:$0xff] %v642_v46  ;;  %v629_v27 = vmax.f32 %v513_v25, %v626_v15  ;;  %v1952_v25 = vld [vmem:[#allocation4 + $0x248] sm:$0xff]  ;;  %v1958_v15 = vld [vmem:[#allocation4 + $0x1d0] sm:$0xff] }
 0x186   :  { %664 = vst.msk [vmem:[#allocation2] sm:$0xff] %vm663_vm6, %v649_v26  ;;  %v1956_v46 = vld [vmem:[#allocation4 + $0x2c8] sm:$0xff]  ;;  %925 = vmatpush.msra.mxu0 %v1952_v25  ;;  %904 = vmatpush.msra.mxu1 %v1958_v15 }
 0x187   :  { %v634_v28 = vadd.f32 %v1436_v62, %v629_v27  ;;  %v1874_v62 = vld [vmem:[#allocation4 + $0x170] sm:$0xff]  ;;  %v1960_v27 = vld [vmem:[#allocation4 + $0x138] sm:$0xff]  ;;  %942 = vmatpush.msrb.mxu3 %v1956_v46 }
 0x188   :  { %880 = vmatpush.msrb.mxu2 %v1874_v62 }
 0x189   :  { %v637_v29 = vmax.f32 %v634_v28, 0.0 }
 0x18a   :  { %v650_v30 = vld.sshfl [vmem:[#allocation1 + $0x10] sm:$0xff pattern:$0x75316420]  ;;  %881 = vmatpush.msrb.mxu2 %v1888_v2 }
 0x18b   :  { %v643_v31 = vrot.slane %v637_v29, 4  ;;  %654 = vst [vmem:[#allocation1 + $0x21] ss:$2 sm:$0xff] %v637_v29  ;;  %v1966_v29 = vld [vmem:[#allocation4 + $0x240] sm:$0xff] }
 0x18c   :  { %666 = vst.msk [vmem:[#allocation2 + $0x8] sm:$0xf] %vm665_vm7, %v650_v30  ;;  %882 = vmatpush.msrb.mxu2 %v1900_v5  ;;  %v1968_v30 = vld [vmem:[#allocation4 + $0x2c0] sm:$0xff]  ;;  %926 = vmatpush.msra.mxu0 %v1966_v29 }
 0x18d   :  { %656 = vst [vmem:[#allocation1 + $0x30] ss:$2 sm:$0xff] %v643_v31  ;;  %v669_v32 = vld [vmem:[#allocation2] ss:$2 sm:$0xf]  ;;  %943 = vmatpush.msrb.mxu3 %v1968_v30 }
 0x18e   :  { %690 = vst [vmem:[#allocation1] ss:$2 sm:$0xff] %v669_v32  ;;  %v673_v49 = vld [vmem:[#allocation2 + $0x1] ss:$2 sm:$0xf]  ;;  %883 = vmatpush.msrb.mxu2 %v1910_v9  ;;  %v1970_v32 = vld [vmem:[#allocation4 + $0x130] sm:$0xff] }
 0x190   :  { %884 = vmatpush.msrb.mxu2 %v1924_v16 }
 0x192   :  { %v657_v33 = vld.sshfl [vmem:[#allocation1 + $0x20] sm:$0xff pattern:$0x75316420]  ;;  %885 = vmatpush.msrb.mxu2 %v1936_v20 }
 0x193   :  { %667 = vst.msk [vmem:[#allocation2 + $0x10] sm:$0xff] %vm663_vm6, %v657_v33  ;;  %v677_v38 = vld [vmem:[#allocation2 + $0x2] ss:$2 sm:$0xf]  ;;  %v1974_v33 = vld [vmem:[#allocation4 + $0x1c8] sm:$0xff] }
 0x194   :  { %v658_v34 = vld.sshfl [vmem:[#allocation1 + $0x30] sm:$0xff pattern:$0x75316420]  ;;  %886 = vmatpush.msrb.mxu2 %v1948_v24  ;;  %905 = vmatpush.msra.mxu1 %v1974_v33 }
 0x195   :  { %668 = vst.msk [vmem:[#allocation2 + $0x18] sm:$0xf] %vm665_vm7, %v658_v34  ;;  %v681_v51 = vld [vmem:[#allocation2 + $0x3] ss:$2 sm:$0xf] }
 0x196   :  { %v1838_v43 = vld [vmem:[#allocation2 + $0x4] ss:$2 sm:$0xf]  ;;  %v739_v26 = vld [vmem:[#allocation2 + $0x5] ss:$2 sm:$0xf]  ;;  %887 = vmatpush.msrb.mxu2 %v1960_v27 }
 0x197   :  { %v1978_v34 = vld [vmem:[#allocation4 + $0x238] sm:$0xff] }
 0x198   :  { %2253 = vst [vmem:[#allocation11_spill] sm:$0xff] %v1978_v34  ;;  %888 = vmatpush.msrb.mxu2 %v1970_v32  ;;  %927 = vmatpush.msra.mxu0 %v1978_v34  ;;  %v2055_v34 = vld [vmem:[#allocation4 + $0x3e8] sm:$0xff] }
 0x19a   :  { %v671_v35 = vld [vmem:[#allocation2 + $0x10] ss:$2 sm:$0xf]  ;;  %v675_v37 = vld [vmem:[#allocation2 + $0x11] ss:$2 sm:$0xf] }
 0x19b   :  { %692 = vst [vmem:[#allocation1 + $0x1] ss:$2 sm:$0xff] %v671_v35  ;;  %v1980_v35 = vld [vmem:[#allocation4 + $0x2b8] sm:$0xff] }
 0x19c   :  { %v679_v40 = vld [vmem:[#allocation2 + $0x12] ss:$2 sm:$0xf]  ;;  %v683_v42 = vld [vmem:[#allocation2 + $0x13] ss:$2 sm:$0xf]  ;;  %944 = vmatpush.msrb.mxu3 %v1980_v35 }
 0x19d   :  { %v1840_v45 = vld [vmem:[#allocation2 + $0x14] ss:$2 sm:$0xf]  ;;  %v741_v28 = vld [vmem:[#allocation2 + $0x15] ss:$2 sm:$0xf] }
 0x1a2   :  { %v1834_v36 = vld.sshfl [vmem:[#allocation1] sm:$0xff pattern:$0x75316420] }
 0x1a3   :  { %697 = vst [vmem:[#allocation1] ss:$2 sm:$0xff] %v673_v49 }
 0x1a4   :  { %699 = vst [vmem:[#allocation1 + $0x1] ss:$2 sm:$0xff] %v675_v37 }
 0x1ab   :  { %v700_v39 = vld.sshfl [vmem:[#allocation1] sm:$0xff pattern:$0x75316420] }
 0x1ac   :  { %701 = vrot.lane.b32.xlu0 %v700_v39, %s1500_s0  ;;  %706 = vst [vmem:[#allocation1] ss:$2 sm:$0xff] %v677_v38  ;;  %v1992_v39 = vld [vmem:[#allocation4 + $0x2b0] sm:$0xff] }
 0x1ad   :  { %708 = vst [vmem:[#allocation1 + $0x1] ss:$2 sm:$0xff] %v679_v40  ;;  %945 = vmatpush.msrb.mxu3 %v1992_v39 }
 0x1b4   :  { %v709_v41 = vld.sshfl [vmem:[#allocation1] sm:$0xff pattern:$0x75316420] }
 0x1b5   :  { %710 = vrot.lane.b32.xlu1 %v709_v41, %s1501_s10  ;;  %715 = vst [vmem:[#allocation1] ss:$2 sm:$0xff] %v681_v51  ;;  %v2001_v41 = vld [vmem:[#allocation4 + $0x380] sm:$0xff] }
 0x1b6   :  { %717 = vst [vmem:[#allocation1 + $0x1] ss:$2 sm:$0xff] %v683_v42 }
 0x1bd   :  { %v718_v44 = vld.sshfl [vmem:[#allocation1] sm:$0xff pattern:$0x75316420] }
 0x1be   :  { %719 = vrot.lane.b32.xlu2 %v718_v44, %s1502_s11  ;;  %724 = vst [vmem:[#allocation1] ss:$2 sm:$0xff] %v1838_v43  ;;  %v2011_v44 = vld [vmem:[#allocation4 + $0x370] sm:$0xff] }
 0x1bf   :  { %726 = vst [vmem:[#allocation1 + $0x1] ss:$2 sm:$0xff] %v1840_v45 }
 0x1c0   :  { %2256 = vst [vmem:[#allocation14_spill] sm:$0xff] %v2011_v44 }
 0x1c6   :  { %v727_v47 = vld.sshfl [vmem:[#allocation1] sm:$0xff pattern:$0x75316420] }
 0x1c7   :  { %728 = vrot.lane.b32.xlu0 %v727_v47, %s1503_s12  ;;  %742 = vst [vmem:[#allocation1] ss:$2 sm:$0xff] %v673_v49  ;;  %v1982_v49 = vld [vmem:[#allocation4 + $0x128] sm:$0xff]  ;;  %v2018_v47 = vld [vmem:[#allocation4 + $0x360] sm:$0xff] }
 0x1c8   :  { %744 = vst [vmem:[#allocation1 + $0x1] ss:$2 sm:$0xff] %v675_v37  ;;  %v1986_v37 = vld [vmem:[#allocation4 + $0x1c0] sm:$0xff]  ;;  %889 = vmatpush.msrb.mxu2 %v1982_v49 }
 0x1c9   :  { %906 = vmatpush.msra.mxu1 %v1986_v37  ;;  %2258 = vst [vmem:[#allocation16_spill] sm:$0xff] %v2018_v47 }
 0x1cf   :  { %v1849_v50 = vld.sshfl [vmem:[#allocation1] sm:$0xff pattern:$0x75316420] }
 0x1d0   :  { %2252 = vst [vmem:[#allocation10_spill] sm:$0xff] %v1849_v50  ;;  %v2037_v50 = vld [vmem:[#allocation4 + $0x1a8] sm:$0xff] }
 0x1d1   :  { %747 = vst [vmem:[#allocation1] ss:$2 sm:$0xff] %v677_v38  ;;  %v1990_v38 = vld [vmem:[#allocation4 + $0x230] sm:$0xff] }
 0x1d2   :  { %749 = vst [vmem:[#allocation1 + $0x1] ss:$2 sm:$0xff] %v679_v40  ;;  %v1994_v40 = vld [vmem:[#allocation4 + $0x120] sm:$0xff]  ;;  %928 = vmatpush.msra.mxu0 %v1990_v38 }
 0x1d3   :  { %2254 = vst [vmem:[#allocation12_spill] sm:$0xff] %v1990_v38  ;;  %890 = vmatpush.msrb.mxu2 %v1994_v40  ;;  %v2041_v38 = vld [vmem:[#allocation4 + $0x350] sm:$0xff] }
 0x1d4   :  { %2262 = vst [vmem:[#allocation20_spill] sm:$0xff] %v2041_v38 }
 0x1d5   :  { %955 = vmatpush.msra.mxu2 %v2001_v41 }
 0x1d9   :  { %v750_v57 = vld.sshfl [vmem:[#allocation1] sm:$0xff pattern:$0x75316420] }
 0x1da   :  { %751 = vrot.lane.b32.xlu1 %v750_v57, %s1500_s0  ;;  %754 = vst [vmem:[#allocation1] ss:$2 sm:$0xff] %v681_v51  ;;  %v1998_v51 = vld [vmem:[#allocation4 + $0x1b8] sm:$0xff]  ;;  %v2021_v57 = vld [vmem:[#allocation4 + $0x228] sm:$0xff] }
 0x1db   :  { %756 = vst [vmem:[#allocation1 + $0x1] ss:$2 sm:$0xff] %v683_v42  ;;  %v2007_v42 = vld [vmem:[#allocation4 + $0x378] sm:$0xff]  ;;  %907 = vmatpush.msra.mxu1 %v1998_v51  ;;  %929 = vmatpush.msra.mxu0 %v2021_v57 }
 0x1dc   :  { %2255 = vst [vmem:[#allocation13_spill] sm:$0xff] %v2007_v42  ;;  %956 = vmatpush.msra.mxu2 %v2007_v42  ;;  %v2061_v42 = vld [vmem:[#allocation4 + $0x340] sm:$0xff] }
 0x1dd   :  { %2259 = vst [vmem:[#allocation17_spill] sm:$0xff] %v2021_v57  ;;  %v2045_v57 = vld [vmem:[#allocation4 + $0x1a0] sm:$0xff] }
 0x1de   :  { %957 = vmatpush.msra.mxu2 %v2011_v44  ;;  %v2049_v44 = vld [vmem:[#allocation4 + $0x290] sm:$0xff] }
 0x1df   :  { %2263 = vst [vmem:[#allocation21_spill] sm:$0xff] %v2049_v44 }
 0x1e2   :  { %v757_v11 = vld.sshfl [vmem:[#allocation1] sm:$0xff pattern:$0x75316420] }
 0x1e3   :  { %758 = vrot.lane.b32.xlu2 %v757_v11, %s1501_s10  ;;  %761 = vst [vmem:[#allocation1] ss:$2 sm:$0xff] %v1838_v43  ;;  %v2023_v11 = vld [vmem:[#allocation4 + $0x2a8] sm:$0xff] }
 0x1e4   :  { %763 = vst [vmem:[#allocation1 + $0x1] ss:$2 sm:$0xff] %v1840_v45  ;;  %v2015_v45 = vld [vmem:[#allocation4 + $0x368] sm:$0xff]  ;;  %946 = vmatpush.msrb.mxu3 %v2023_v11 }
 0x1e5   :  { %2257 = vst [vmem:[#allocation15_spill] sm:$0xff] %v2015_v45  ;;  %958 = vmatpush.msra.mxu2 %v2015_v45  ;;  %v2039_v45 = vld [vmem:[#allocation4 + $0x298] sm:$0xff] }
 0x1e7   :  { %959 = vmatpush.msra.mxu2 %v2018_v47  ;;  %v2051_v47 = vld [vmem:[#allocation4 + $0x348] sm:$0xff] }
 0x1e8   :  { %2264 = vst [vmem:[#allocation22_spill] sm:$0xff] %v2051_v47 }
 0x1eb   :  { %v764_v31 = vld.sshfl [vmem:[#allocation1] sm:$0xff pattern:$0x75316420] }
 0x1ec   :  { %765 = vrot.lane.b32.xlu0 %v764_v31, %s1502_s11  ;;  %770 = vst [vmem:[#allocation1] ss:$2 sm:$0xff] %v739_v26  ;;  %v2025_v26 = vld [vmem:[#allocation4 + $0x1b0] sm:$0xff]  ;;  %v2031_v31 = vld [vmem:[#allocation4 + $0x220] sm:$0xff] }
 0x1ed   :  { %772 = vst [vmem:[#allocation1 + $0x1] ss:$2 sm:$0xff] %v741_v28  ;;  %v2027_v28 = vld [vmem:[#allocation4 + $0x358] sm:$0xff]  ;;  %908 = vmatpush.msra.mxu1 %v2025_v26  ;;  %930 = vmatpush.msra.mxu0 %v2031_v31 }
 0x1ee   :  { %2260 = vst [vmem:[#allocation18_spill] sm:$0xff] %v2027_v28  ;;  %960 = vmatpush.msra.mxu2 %v2027_v28  ;;  %v2065_v28 = vld [vmem:[#allocation4 + $0x3e0] sm:$0xff] }
 0x1ef   :  { %2261 = vst [vmem:[#allocation19_spill] sm:$0xff] %v2031_v31  ;;  %909 = vmatpush.msra.mxu1 %v2037_v50  ;;  %999 = vmatpush.msrb.mxu0 %v1846_v48  ;;  %v2059_v31 = vld [vmem:[#allocation4 + $0x288] sm:$0xff]  ;;  %v2069_v48 = vld [vmem:[#allocation4 + $0x338] sm:$0xff] }
 0x1f0   :  { %961 = vmatpush.msra.mxu2 %v2041_v38  ;;  %v2073_v38 = vld [vmem:[#allocation4 + $0x3d8] sm:$0xff] }
 0x1f1   :  { %910 = vmatpush.msra.mxu1 %v2045_v57  ;;  %1000 = vmatpush.msrb.mxu0 %v1851_v52  ;;  %v2077_v52 = vld [vmem:[#allocation4 + $0x330] sm:$0xff] }
 0x1f2   :  { %962 = vmatpush.msra.mxu2 %v2051_v47  ;;  %v2088_v47 = vld [vmem:[#allocation4 + $0x3c8] sm:$0xff] }
 0x1f3   :  { %978 = vmatpush.msrb.mxu1 %v2055_v34  ;;  %1001 = vmatpush.msrb.mxu0 %v1853_v53  ;;  %v2085_v53 = vld [vmem:[#allocation4 + $0x328] sm:$0xff] }
 0x1f4   :  { %v773_v43 = vld.sshfl [vmem:[#allocation1] sm:$0xff pattern:$0x75316420]  ;;  %963 = vmatpush.msra.mxu2 %v2061_v42 }
 0x1f5   :  { %774 = vrot.lane.b32.xlu1 %v773_v43, %s1503_s12  ;;  %v2033_v43 = vld [vmem:[#allocation4 + $0x2a0] sm:$0xff]  ;;  %979 = vmatpush.msrb.mxu1 %v2065_v28 }
 0x1f6   :  { %947 = vmatpush.msrb.mxu3 %v2033_v43  ;;  %1002 = vmatpush.msrb.mxu0 %v1856_v54  ;;  %v2093_v54 = vld [vmem:[#allocation4 + $0x320] sm:$0xff] }
 0x1f7   :  { %964 = vmatpush.msra.mxu2 %v2069_v48  ;;  %980 = vmatpush.msrb.mxu1 %v2073_v38 }
 0x1f8   :  { %948 = vmatpush.msrb.mxu3 %v2039_v45  ;;  %1003 = vmatpush.msrb.mxu0 %v1863_v58  ;;  %v2101_v58 = vld [vmem:[#allocation4 + $0x318] sm:$0xff] }
 0x1f9   :  { %965 = vmatpush.msra.mxu2 %v2077_v52 }
 0x1fa   :  { %949 = vmatpush.msrb.mxu3 %v2049_v44  ;;  %v2080_v44 = vld [vmem:[#allocation4 + $0x3d0] sm:$0xff]  ;;  %1004 = vmatpush.msrb.mxu0 %v1874_v62 }
 0x1fb   :  { %981 = vmatpush.msrb.mxu1 %v2080_v44  ;;  %966 = vmatpush.msra.mxu2 %v2085_v53  ;;  %v2109_v62 = vld [vmem:[#allocation4 + $0x310] sm:$0xff] }
 0x1fc   :  { %950 = vmatpush.msrb.mxu3 %v2059_v31  ;;  %1005 = vmatpush.msrb.mxu0 %v1888_v2  ;;  %v2117_v2 = vld [vmem:[#allocation4 + $0x308] sm:$0xff] }
 0x1fd   :  { %982 = vmatpush.msrb.mxu1 %v2088_v47  ;;  %967 = vmatpush.msra.mxu2 %v2093_v54 }
 0x1fe   :  { %1019 = vmatpush.msra.mxu3 %v1859_v55  ;;  %v2099_v55 = vld [vmem:[#allocation4 + $0x3c0] sm:$0xff]  ;;  %1006 = vmatpush.msrb.mxu0 %v1900_v5 }
 0x1ff   :  { %983 = vmatpush.msrb.mxu1 %v2099_v55  ;;  %968 = vmatpush.msra.mxu2 %v2101_v58  ;;  %v2126_v5 = vld [vmem:[#allocation4 + $0x3a0] sm:$0xff] }
 0x200   :  { %1020 = vmatpush.msra.mxu3 %v1861_v56  ;;  %v2107_v56 = vld [vmem:[#allocation4 + $0x3b8] sm:$0xff]  ;;  %1007 = vmatpush.msrb.mxu0 %v1910_v9  ;;  %v2142_v9 = vld [vmem:[#allocation4 + $0x388] sm:$0xff] }
 0x201   :  { %984 = vmatpush.msrb.mxu1 %v2107_v56  ;;  %969 = vmatpush.msra.mxu2 %v2109_v62 }
 0x202   :  { %1021 = vmatpush.msra.mxu3 %v1872_v61  ;;  %v2112_v61 = vld [vmem:[#allocation4 + $0x3b0] sm:$0xff]  ;;  %1008 = vmatpush.msrb.mxu0 %v1924_v16 }
 0x203   :  { %985 = vmatpush.msrb.mxu1 %v2112_v61  ;;  %970 = vmatpush.msra.mxu2 %v2117_v2 }
 0x204   :  { %1022 = vmatpush.msra.mxu3 %v1884_v0  ;;  %v2120_v0 = vld [vmem:[#allocation4 + $0x3a8] sm:$0xff]  ;;  %1009 = vmatpush.msrb.mxu0 %v1936_v20 }
 0x205   :  { %986 = vmatpush.msrb.mxu1 %v2120_v0 }
 0x206   :  { %1023 = vmatpush.msra.mxu3 %v1896_v13  ;;  %v2132_v13 = vld [vmem:[#allocation4 + $0x398] sm:$0xff]  ;;  %1010 = vmatpush.msrb.mxu0 %v1948_v24  ;;  %v2277_v24 = vld [vmem:[#allocation10_spill] sm:$0xff] }
 0x207   :  { %987 = vmatpush.msrb.mxu1 %v2126_v5 }
 0x208   :  { %1024 = vmatpush.msra.mxu3 %v1908_v7  ;;  %v2137_v7 = vld [vmem:[#allocation4 + $0x390] sm:$0xff]  ;;  %1011 = vmatpush.msrb.mxu0 %v1960_v27 }
 0x209   :  { %988 = vmatpush.msrb.mxu1 %v2132_v13 }
 0x20a   :  { %1025 = vmatpush.msra.mxu3 %v1920_v14  ;;  %1012 = vmatpush.msrb.mxu0 %v1970_v32 }
 0x20b   :  { %989 = vmatpush.msrb.mxu1 %v2137_v7 }
 0x20c   :  { %1026 = vmatpush.msra.mxu3 %v1934_v19  ;;  %1013 = vmatpush.msrb.mxu0 %v1982_v49 }
 0x20d   :  { %990 = vmatpush.msrb.mxu1 %v2142_v9 }
 0x20e   :  { %1027 = vmatpush.msra.mxu3 %v1946_v23  ;;  %1014 = vmatpush.msrb.mxu0 %v1994_v40 }
 0x210   :  { %1028 = vmatpush.msra.mxu3 %v1958_v15 }
 0x212   :  { %1029 = vmatpush.msra.mxu3 %v1974_v33 }
 0x214   :  { %1030 = vmatpush.msra.mxu3 %v1986_v37 }
 0x216   :  { %1031 = vmatpush.msra.mxu3 %v1998_v51 }
 0x218   :  { %1032 = vmatpush.msra.mxu3 %v2025_v26  ;;  %v720_v20 = vpop.permute.xlu2 %719 }
 0x21a   :  { %1033 = vmatpush.msra.mxu3 %v2037_v50 }
 0x21c   :  { %1034 = vmatpush.msra.mxu3 %v2045_v57  ;;  %v1180_v57 = vld [vmem:[#allocation4 + $0x458] sm:$0xff] }
 0x21e   :  { %v702_v14 = vpop.permute.xlu0 %701 }
 0x21f   :  { %v731_v16 = vsel %vm663_vm6, %v1834_v36, %v702_v14 }
 0x220   :  { %891 = vmatmul.f32.vlgmr.msrb.gmra.mxu2 %v731_v16  ;;  %951 = vmatmul.f32.vlgmr.msrb.gmra.mxu3 %v731_v16  ;;  %v1192_v16 = vld [vmem:[#allocation4 + $0x4b8] sm:$0xff] }
 0x221   :  { %1059 = vmatpush.msrb.mxu2 %v1870_v60 }
 0x223   :  { %1060 = vmatpush.msrb.mxu2 %v1880_v63  ;;  %v2266_v63 = vld [vmem:[#allocation21_spill] sm:$0xff] }
 0x225   :  { %1061 = vmatpush.msrb.mxu2 %v1892_v3  ;;  %v2268_v3 = vld [vmem:[#allocation14_spill] sm:$0xff] }
 0x227   :  { %v711_v19 = vpop.permute.xlu1 %710  ;;  %1062 = vmatpush.msrb.mxu2 %v1904_v6  ;;  %v2270_v6 = vld [vmem:[#allocation15_spill] sm:$0xff] }
 0x228   :  { %v733_v36 = vsel %vm732_vm8, %v702_v14, %v711_v19  ;;  %v1176_v14 = vld [vmem:[#allocation4 + $0x438] sm:$0xff] }
 0x229   :  { %v735_v50 = vsel %vm734_vm9, %v733_v36, %v720_v20  ;;  %1063 = vmatpush.msrb.mxu2 %v1918_v12  ;;  %v2272_v12 = vld [vmem:[#allocation16_spill] sm:$0xff]  ;;  %v1191_v36 = vld [vmem:[#allocation4 + $0x4b0] sm:$0xff] }
 0x22a   :  { %911 = vmatmul.f32.vlgmr.msra.gmra.mxu1 %v735_v50  ;;  %971 = vmatmul.f32.vlgmr.msra.gmra.mxu2 %v735_v50 }
 0x22b   :  { %1064 = vmatpush.msrb.mxu2 %v1932_v18  ;;  %1042 = vmatpush.msra.mxu1 %v1866_v59  ;;  %v2274_v18 = vld [vmem:[#allocation18_spill] sm:$0xff] }
 0x22d   :  { %1065 = vmatpush.msrb.mxu2 %v1944_v22  ;;  %1043 = vmatpush.msra.mxu1 %v1878_v8  ;;  %v2265_v8 = vld [vmem:[#allocation13_spill] sm:$0xff]  ;;  %v2276_v22 = vld [vmem:[#allocation22_spill] sm:$0xff] }
 0x22f   :  { %1066 = vmatpush.msrb.mxu2 %v1956_v46  ;;  %1044 = vmatpush.msra.mxu1 %v1886_v1  ;;  %v2267_v1 = vld [vmem:[#allocation11_spill] sm:$0xff] }
 0x231   :  { %1067 = vmatpush.msrb.mxu2 %v1968_v30  ;;  %1045 = vmatpush.msra.mxu1 %v1898_v4  ;;  %v2269_v4 = vld [vmem:[#allocation12_spill] sm:$0xff] }
 0x233   :  { %1068 = vmatpush.msrb.mxu2 %v1980_v35  ;;  %1046 = vmatpush.msra.mxu1 %v1914_v10  ;;  %v2271_v10 = vld [vmem:[#allocation17_spill] sm:$0xff] }
 0x235   :  { %1069 = vmatpush.msrb.mxu2 %v1992_v39  ;;  %1047 = vmatpush.msra.mxu1 %v1927_v17  ;;  %v2273_v17 = vld [vmem:[#allocation19_spill] sm:$0xff] }
 0x237   :  { %1070 = vmatpush.msrb.mxu2 %v2023_v11  ;;  %1048 = vmatpush.msra.mxu1 %v1940_v21  ;;  %v2275_v21 = vld [vmem:[#allocation20_spill] sm:$0xff] }
 0x238   :  { %v1196_v11 = vld [vmem:[#allocation4 + $0x4d8] sm:$0xff] }
 0x239   :  { %v729_v59 = vpop.permute.xlu0 %728  ;;  %1071 = vmatpush.msrb.mxu2 %v2033_v43  ;;  %1049 = vmatpush.msra.mxu1 %v1952_v25 }
 0x23a   :  { %v737_v60 = vsel %vm736_vm10, %v720_v20, %v729_v59  ;;  %v1175_v20 = vld [vmem:[#allocation4 + $0x430] sm:$0xff]  ;;  %v1174_v59 = vld [vmem:[#allocation4 + $0x428] sm:$0xff] }
 0x23b   :  { %1381 = vmatmul.msk.f32.vlgmr.msra.gmra.mxu0 %vm871_vm11, %v737_v60  ;;  %1382 = vmatmul.msk.f32.vlgmr.msrb.gmra.mxu1 %vm871_vm11, %v737_v60  ;;  %v1190_v60 = vld [vmem:[#allocation4 + $0x4a8] sm:$0xff] }
 0x23c   :  { %1079 = vmatpush.msra.mxu0 %v2001_v41  ;;  %1072 = vmatpush.msrb.mxu2 %v2039_v45  ;;  %v1182_v41 = vld [vmem:[#allocation4 + $0x468] sm:$0xff]  ;;  %v1197_v45 = vld [vmem:[#allocation4 + $0x4e0] sm:$0xff] }
 0x23d   :  { %1050 = vmatpush.msra.mxu1 %v1966_v29  ;;  %v759_v46 = vpop.permute.xlu2 %758  ;;  %1201 = vmatpush.msrb.mxu3 %v1182_v41  ;;  %v1251_v41 = vld [vmem:[#allocation4 + $0x538] sm:$0xff] }
 0x23e   :  { %1080 = vmatpush.msra.mxu0 %v2265_v8  ;;  %1073 = vmatpush.msrb.mxu2 %v2266_v63  ;;  %v1173_v63 = vld [vmem:[#allocation4 + $0x420] sm:$0xff] }
 0x23f   :  { %1051 = vmatpush.msra.mxu1 %v2267_v1  ;;  %v1189_v1 = vld [vmem:[#allocation4 + $0x4a0] sm:$0xff] }
 0x240   :  { %1081 = vmatpush.msra.mxu0 %v2268_v3  ;;  %1074 = vmatpush.msrb.mxu2 %v2059_v31 }
 0x241   :  { %1052 = vmatpush.msra.mxu1 %v2269_v4  ;;  %v1172_v4 = vld [vmem:[#allocation4 + $0x418] sm:$0xff] }
 0x242   :  { %1082 = vmatpush.msra.mxu0 %v2270_v6  ;;  %v1188_v6 = vld [vmem:[#allocation4 + $0x498] sm:$0xff] }
 0x243   :  { %1053 = vmatpush.msra.mxu1 %v2271_v10  ;;  %v1171_v10 = vld [vmem:[#allocation4 + $0x410] sm:$0xff] }
 0x244   :  { %1083 = vmatpush.msra.mxu0 %v2272_v12  ;;  %v1187_v12 = vld [vmem:[#allocation4 + $0x490] sm:$0xff] }
 0x245   :  { %1054 = vmatpush.msra.mxu1 %v2273_v17  ;;  %v1170_v17 = vld [vmem:[#allocation4 + $0x408] sm:$0xff] }
 0x246   :  { %1084 = vmatpush.msra.mxu0 %v2274_v18  ;;  %v1186_v18 = vld [vmem:[#allocation4 + $0x488] sm:$0xff] }
 0x247   :  { %1102 = vmatpush.msrb.mxu1 %v2055_v34 }
 0x248   :  { %1085 = vmatpush.msra.mxu0 %v2275_v21  ;;  %v1169_v21 = vld [vmem:[#allocation4 + $0x400] sm:$0xff] }
 0x249   :  { %1103 = vmatpush.msrb.mxu1 %v2065_v28 }
 0x24a   :  { %1086 = vmatpush.msra.mxu0 %v2276_v22  ;;  %v1185_v22 = vld [vmem:[#allocation4 + $0x480] sm:$0xff] }
 0x24b   :  { %1104 = vmatpush.msrb.mxu1 %v2073_v38 }
 0x24c   :  { %v752_v23 = vpop.permute.xlu1 %751  ;;  %1087 = vmatpush.msra.mxu0 %v2061_v42  ;;  %v1198_v42 = vld [vmem:[#allocation4 + $0x4e8] sm:$0xff] }
 0x24d   :  { %v777_v25 = vsel %vm663_vm6, %v2277_v24, %v752_v23  ;;  %1105 = vmatpush.msrb.mxu1 %v2080_v44  ;;  %v778_v15 = vsel %vm732_vm8, %v752_v23, %v759_v46  ;;  %v1181_v44 = vld [vmem:[#allocation4 + $0x460] sm:$0xff]  ;;  %1221 = vmatpush.msra.mxu2 %v1198_v42  ;;  %v1250_v42 = vld [vmem:[#allocation4 + $0x530] sm:$0xff] }
 0x24e   :  { %1015 = vmatmul.f32.vlgmr.msrb.gmra.mxu0 %v777_v25  ;;  %1075 = vmatmul.f32.vlgmr.msrb.gmra.mxu2 %v777_v25 }
 0x24f   :  { %1088 = vmatpush.msra.mxu0 %v2069_v48  ;;  %1106 = vmatpush.msrb.mxu1 %v2088_v47  ;;  %v1179_v48 = vld [vmem:[#allocation4 + $0x450] sm:$0xff] }
 0x250   :  { %1202 = vmatpush.msrb.mxu3 %v1181_v44  ;;  %1222 = vmatpush.msra.mxu2 %v1197_v45  ;;  %v1249_v44 = vld [vmem:[#allocation4 + $0x528] sm:$0xff]  ;;  %v1248_v45 = vld [vmem:[#allocation4 + $0x520] sm:$0xff] }
 0x251   :  { %1089 = vmatpush.msra.mxu0 %v2077_v52  ;;  %1107 = vmatpush.msrb.mxu1 %v2099_v55  ;;  %v1195_v52 = vld [vmem:[#allocation4 + $0x4d0] sm:$0xff] }
 0x252   :  { %1203 = vmatpush.msrb.mxu3 %v1180_v57  ;;  %1223 = vmatpush.msra.mxu2 %v1196_v11  ;;  %v1246_v57 = vld [vmem:[#allocation4 + $0x510] sm:$0xff] }
 0x253   :  { %1090 = vmatpush.msra.mxu0 %v2085_v53  ;;  %1108 = vmatpush.msrb.mxu1 %v2107_v56  ;;  %v1178_v56 = vld [vmem:[#allocation4 + $0x448] sm:$0xff] }
 0x254   :  { %1204 = vmatpush.msrb.mxu3 %v1179_v48  ;;  %1224 = vmatpush.msra.mxu2 %v1195_v52 }
 0x255   :  { %1091 = vmatpush.msra.mxu0 %v2093_v54  ;;  %1109 = vmatpush.msrb.mxu1 %v2112_v61 }
 0x256   :  { %1205 = vmatpush.msrb.mxu3 %v1178_v56 }
 0x257   :  { %1092 = vmatpush.msra.mxu0 %v2101_v58  ;;  %1110 = vmatpush.msrb.mxu1 %v2120_v0  ;;  %v1177_v0 = vld [vmem:[#allocation4 + $0x440] sm:$0xff] }
 0x258   :  { %1206 = vmatpush.msrb.mxu3 %v1177_v0  ;;  %v1243_v0 = vld [vmem:[#allocation4 + $0x4f8] sm:$0xff] }
 0x259   :  { %1093 = vmatpush.msra.mxu0 %v2109_v62  ;;  %1111 = vmatpush.msrb.mxu1 %v2126_v5  ;;  %v1194_v62 = vld [vmem:[#allocation4 + $0x4c8] sm:$0xff]  ;;  %v1193_v5 = vld [vmem:[#allocation4 + $0x4c0] sm:$0xff] }
 0x25a   :  { %1225 = vmatpush.msra.mxu2 %v1194_v62  ;;  %1207 = vmatpush.msrb.mxu3 %v1176_v14  ;;  %v1291_v14 = vld [vmem:[#allocation4 + $0x5a0] sm:$0xff] }
 0x25b   :  { %1094 = vmatpush.msra.mxu0 %v2117_v2  ;;  %1112 = vmatpush.msrb.mxu1 %v2132_v13 }
 0x25c   :  { %1226 = vmatpush.msra.mxu2 %v1193_v5  ;;  %1208 = vmatpush.msrb.mxu3 %v1175_v20  ;;  %v1242_v5 = vld [vmem:[#allocation4 + $0x4f0] sm:$0xff]  ;;  %v1288_v20 = vld [vmem:[#allocation4 + $0x588] sm:$0xff] }
 0x25d   :  { %1113 = vmatpush.msrb.mxu1 %v2137_v7 }
 0x25e   :  { %v766_v27 = vpop.permute.xlu0 %765  ;;  %1227 = vmatpush.msra.mxu2 %v1192_v16  ;;  %1209 = vmatpush.msrb.mxu3 %v1174_v59  ;;  %v1290_v16 = vld [vmem:[#allocation4 + $0x598] sm:$0xff] }
 0x25f   :  { %v779_v29 = vsel %vm734_vm9, %v778_v15, %v766_v27  ;;  %1114 = vmatpush.msrb.mxu1 %v2142_v9  ;;  %v1437_v9 = vld [vmem:[#allocation4 + $0x5c1] ss:$0 sm:$0xff] }
 0x260   :  { %1035 = vmatmul.f32.vlgmr.msra.gmra.mxu3 %v779_v29  ;;  %1095 = vmatmul.f32.vlgmr.msra.gmra.mxu0 %v779_v29 }
 0x261   :  { %1228 = vmatpush.msra.mxu2 %v1191_v36  ;;  %1210 = vmatpush.msrb.mxu3 %v1173_v63  ;;  %v1287_v36 = vld [vmem:[#allocation4 + $0x580] sm:$0xff] }
 0x263   :  { %1229 = vmatpush.msra.mxu2 %v1190_v60  ;;  %1211 = vmatpush.msrb.mxu3 %v1172_v4  ;;  %v1285_v4 = vld [vmem:[#allocation4 + $0x570] sm:$0xff] }
 0x265   :  { %1230 = vmatpush.msra.mxu2 %v1189_v1  ;;  %1212 = vmatpush.msrb.mxu3 %v1171_v10  ;;  %v1439_v10 = vld [vmem:[#allocation4 + $0x5c3] ss:$0 sm:$0xff] }
 0x267   :  { %v775_v30 = vpop.permute.xlu1 %774  ;;  %1231 = vmatpush.msra.mxu2 %v1188_v6  ;;  %1213 = vmatpush.msrb.mxu3 %v1170_v17  ;;  %v1284_v6 = vld [vmem:[#allocation4 + $0x568] sm:$0xff] }
 0x268   :  { %v780_v32 = vsel %vm736_vm10, %v766_v27, %v775_v30 }
 0x269   :  { %1383 = vmatmul.msk.f32.vlgmr.msra.gmra.mxu1 %vm871_vm11, %v780_v32  ;;  %1232 = vmatpush.msra.mxu2 %v1187_v12 }
 0x26a   :  { %1214 = vmatpush.msrb.mxu3 %v1169_v21  ;;  %v1440_v21 = vld [vmem:[#allocation4 + $0x5c4] ss:$0 sm:$0xff] }
 0x26b   :  { %1233 = vmatpush.msra.mxu2 %v1186_v18 }
 0x26d   :  { %1234 = vmatpush.msra.mxu2 %v1185_v22 }
 0x271   :  { %1384 = vmatmul.msk.f32.vlgmr.msrb.gmra.mxu1 %vm871_vm11, %v780_v32 }
 0x2a3   :  { %v892_v34 = vpop.f32.mrf.mxu2  ;;  %v952_v37 = vpop.f32.mrf.mxu3 }
 0x2a7   :  { %v912_v33 = vpop.f32.mrf.mxu1 }
 0x2a8   :  { %v913_v26 = vadd.f32 %v912_v33, %v892_v34  ;;  %v1168_v33 = vld [vmem:[#allocation4 + $0x3f8] sm:$0xff] }
 0x2a9   :  { %v1184_v34 = vld [vmem:[#allocation4 + $0x478] sm:$0xff]  ;;  %1215 = vmatpush.msrb.mxu3 %v1168_v33 }
 0x2aa   :  { %1235 = vmatpush.msra.mxu2 %v1184_v34 }
 0x2ad   :  { %v972_v39 = vpop.f32.mrf.mxu2 }
 0x2ae   :  { %v973_v28 = vadd.f32 %v972_v39, %v952_v37  ;;  %v1256_v37 = vld [vmem:[#allocation4 + $0x560] sm:$0xff]  ;;  %v1254_v39 = vld [vmem:[#allocation4 + $0x550] sm:$0xff] }
 0x2af   :  { %1264 = vmatpush.msrb.mxu0 %v1256_v37 }
 0x2b8   :  { %v932_v35 = vpop.f32.mrf.mxu0  ;;  %v992_v49 = vpop.f32.mrf.mxu1 }
 0x2b9   :  { %v933_v53 = vadd.f32 %v932_v35, %v913_v26  ;;  %v993_v54 = vadd.f32 %v992_v49, %v973_v28  ;;  %v1167_v35 = vld [vmem:[#allocation4 + $0x3f0] sm:$0xff] }
 0x2ba   :  { %v1183_v49 = vld [vmem:[#allocation4 + $0x470] sm:$0xff]  ;;  %1216 = vmatpush.msrb.mxu3 %v1167_v35 }
 0x2bb   :  { %v995_v13 = vmax.f32 %v933_v53, %v993_v54  ;;  %1236 = vmatpush.msra.mxu2 %v1183_v49 }
 0x2cb   :  { %v1016_v38 = vpop.f32.mrf.mxu0 }
 0x2d1   :  { %v1076_v43 = vpop.f32.mrf.mxu2 }
 0x2dd   :  { %v1096_v47 = vpop.f32.mrf.mxu0 }
 0x2de   :  { %v1097_v55 = vadd.f32 %v1096_v47, %v1076_v43  ;;  %v1247_v47 = vld [vmem:[#allocation4 + $0x518] sm:$0xff] }
 0x2e3   :  { %v1036_v51 = vpop.f32.mrf.mxu3 }
 0x2e4   :  { %v1037_v31 = vadd.f32 %v1036_v51, %v1016_v38  ;;  %v1255_v38 = vld [vmem:[#allocation4 + $0x558] sm:$0xff]  ;;  %v1252_v51 = vld [vmem:[#allocation4 + $0x540] sm:$0xff] }
 0x2e5   :  { %1265 = vmatpush.msrb.mxu0 %v1255_v38 }
 0x2e6   :  { %v1056_v40 = vpop.f32.mrf.mxu1 }
 0x2e7   :  { %v1057_v61 = vadd.f32 %v1056_v40, %v1037_v31  ;;  %v1253_v40 = vld [vmem:[#allocation4 + $0x548] sm:$0xff]  ;;  %1266 = vmatpush.msrb.mxu0 %v1254_v39 }
 0x2e9   :  { %1267 = vmatpush.msrb.mxu0 %v1253_v40 }
 0x2eb   :  { %1268 = vmatpush.msrb.mxu0 %v1252_v51 }
 0x2ed   :  { %1269 = vmatpush.msrb.mxu0 %v1251_v41 }
 0x2ee   :  { %v1116_v58 = vpop.f32.mrf.mxu1 }
 0x2ef   :  { %v1117_v2 = vadd.f32 %v1116_v58, %v1097_v55  ;;  %1270 = vmatpush.msrb.mxu0 %v1250_v42 }
 0x2f1   :  { %v1119_v7 = vmax.f32 %v1057_v61, %v1117_v2  ;;  %1271 = vmatpush.msrb.mxu0 %v1249_v44  ;;  %v1245_v61 = vld [vmem:[#allocation4 + $0x508] sm:$0xff]  ;;  %v1244_v2 = vld [vmem:[#allocation4 + $0x500] sm:$0xff] }
 0x2f3   :  { %v1120_v19 = vmax.f32 %v995_v13, %v1119_v7  ;;  %1272 = vmatpush.msrb.mxu0 %v1248_v45  ;;  %v1294_v13 = vld [vmem:[#allocation4 + $0x5b8] sm:$0xf]  ;;  %v1293_v7 = vld [vmem:[#allocation4 + $0x5b0] sm:$0xff] }
 0x2f4   :  { %1386 = vmatpush.msk.msra.mxu1 %vm400_vm0, %v1294_v13  ;;  %vm1323_vm0 = vcmask 74752  }
 0x2f5   :  { %v1123_v50 = vadd.f32 %v1437_v9, %v1120_v19  ;;  %1273 = vmatpush.msrb.mxu0 %v1247_v47  ;;  %v1292_v9 = vld [vmem:[#allocation4 + $0x5a8] sm:$0xff]  ;;  %v1289_v19 = vld [vmem:[#allocation4 + $0x590] sm:$0xff] }
 0x2f6   :  { %1309 = vmatpush.msra.mxu1 %v1293_v7 }
 0x2f7   :  { %v1124_v8 = vmax.f32 %v1123_v50, 0.0  ;;  %1274 = vmatpush.msrb.mxu0 %v1246_v57  ;;  %v1438_v50 = vld [vmem:[#allocation4 + $0x5c2] ss:$0 sm:$0xff] }
 0x2f8   :  { %1310 = vmatpush.msra.mxu1 %v1292_v9 }
 0x2f9   :  { %v1126_v3 = vrot.slane %v1124_v8, 4  ;;  %1129 = vst.msk [vmem:[#allocation3] sm:$0xf] %vm1128_vm12, %v1124_v8  ;;  %1275 = vmatpush.msrb.mxu0 %v1245_v61 }
 0x2fa   :  { %1311 = vmatpush.msra.mxu1 %v1291_v14 }
 0x2fb   :  { %1130 = vst.msk [vmem:[#allocation3 + $0x4] sm:$0xf] %vm1128_vm12, %v1126_v3  ;;  %1276 = vmatpush.msrb.mxu0 %v1244_v2  ;;  %v1286_v3 = vld [vmem:[#allocation4 + $0x578] sm:$0xff] }
 0x2fc   :  { %1312 = vmatpush.msra.mxu1 %v1290_v16 }
 0x2fd   :  { %1277 = vmatpush.msrb.mxu0 %v1243_v0 }
 0x2fe   :  { %1313 = vmatpush.msra.mxu1 %v1289_v19 }
 0x2ff   :  { %1278 = vmatpush.msrb.mxu0 %v1242_v5 }
 0x300   :  { %v1133_v15 = vld [vmem:[#allocation3 + $0x1] sm:$0x1]  ;;  %v1137_v27 = vld [vmem:[#allocation3 + $0x3] sm:$0x1]  ;;  %v1131_v53 = vld [vmem:[#allocation3] sm:$0x1]  ;;  %1314 = vmatpush.msra.mxu1 %v1288_v20 }
 0x301   :  { %v1135_v54 = vld [vmem:[#allocation3 + $0x2] sm:$0x1] }
 0x302   :  { %v1134_v23 = vld [vmem:[#allocation3 + $0x5] sm:$0x1]  ;;  %v1138_v24 = vld [vmem:[#allocation3 + $0x7] sm:$0x1]  ;;  %v1132_v11 = vld [vmem:[#allocation3 + $0x4] sm:$0x1]  ;;  %1315 = vmatpush.msra.mxu1 %v1287_v36 }
 0x303   :  { %v1147_v25 = vrot.slane %v1134_v23, 7  ;;  %v1159_v46 = vrot.slane %v1138_v24, 7  ;;  %v1136_v26 = vld [vmem:[#allocation3 + $0x6] sm:$0x1]  ;;  %v1141_v28 = vrot.slane %v1132_v11, 7 }
 0x304   :  { %v1154_v31 = vrot.slane %v1136_v26, 7  ;;  %1316 = vmatpush.msra.mxu1 %v1286_v3 }
 0x305   :  { %v1148_v29 = vsel %vm1142_vm13, %v1147_v25, %v1133_v15  ;;  %v1160_v30 = vsel %vm1142_vm13, %v1159_v46, %v1137_v27  ;;  %v1143_v55 = vsel %vm1142_vm13, %v1141_v28, %v1131_v53 }
 0x306   :  { %v1431_v32 = vpack.i.bf16 %v1160_v30, %v1148_v29  ;;  %v1155_v58 = vsel %vm1142_vm13, %v1154_v31, %v1135_v54  ;;  %1317 = vmatpush.msra.mxu1 %v1285_v4 }
 0x308   :  { %1432 = vrot.lane.b32.xlu2 %v1431_v32, %s1504_s13  ;;  %1318 = vmatpush.msra.mxu1 %v1284_v6 }
 0x362   :  { %v1433_v43 = vpop.permute.xlu2 %1432 }
 0x363   :  { %v1435_v48 = vunpack.i.h.bf16 %v1433_v43  ;;  %v1434_v52 = vunpack.i.l.bf16 %v1433_v43 }
 0x365   :  { %v1165_v56 = vsel %vm1164_vm14, %v1143_v55, %v1434_v52  ;;  %v1166_v62 = vsel %vm1164_vm14, %v1155_v58, %v1435_v48 }
 0x366   :  { %1217 = vmatmul.f32.vlgmr.msrb.gmra.mxu3 %v1165_v56  ;;  %1237 = vmatmul.f32.vlgmr.msra.gmra.mxu2 %v1166_v62 }
 0x3e9   :  { %v1218_v59 = vpop.f32.mrf.mxu3  ;;  %v1238_v8 = vpop.f32.mrf.mxu2 }
 0x3ea   :  { %v1219_v60 = vadd.f32 %v1438_v50, %v1218_v59 }
 0x3ec   :  { %v1239_v63 = vadd.f32 %v1238_v8, %v1219_v60 }
 0x3ee   :  { %v1241_v1 = vmax.f32 %v1239_v63, 0.0 }
 0x3f0   :  { %1385 = vmatmul.msk.f32.vlgmr.msrb.gmra.mxu0 %vm1259_vm15, %v1241_v1 }
 0x46d   :  { %v1280_v12 = vpop.f32.mrf.mxu0 }
 0x46e   :  { %v1281_v17 = vadd.f32 %v1439_v10, %v1280_v12 }
 0x470   :  { %v1283_v18 = vmax.f32 %v1281_v17, 0.0 }
 0x472   :  { %1387 = vmatmul.msk.f32.vlgmr.msra.gmra.mxu1 %vm214_vm4, %v1283_v18 }
 0x4ef   :  { %v1320_v22 = vpop.f32.mrf.mxu1 }
 0x4f0   :  { %v1321_v23 = vadd.f32 %v1440_v21, %v1320_v22 }
 0x4f2   :  { %1324 = vst.msk [vmem:[#allocation7] sm:$0x3] %vm1323_vm0, %v1321_v23 }
 0x4f3   :  { %1335 = dma.vmem_to_hbm [thread:$0]  %s1331_s15, 32, %s1333_s18, [#allocation6]  }
 0x4f4   :  { %1491 = dma.done.wait [#allocation6], 32  }
 0x4f5   :  { %1492 = vsyncadd [#allocation6], 4294967264 }
 0x4f6   :  { %1340 = vsyncpa [#allocation5], 1 }
 0x4f7   :  { %1341 = vsyncpa [#allocation6], 1 }

</bundles_post_ra>
